<compile_context>
chip_gen: v7x
topology: tpu7x:2x2x1
jax: 0.10.0
libtpu: 0.0.40
codegen_flags: <defaults>
</compile_context>

<pallas_src>
import numpy as np
import jax
import jax.numpy as jnp
from jax import lax
from jax.experimental import pallas as pl
from jax.experimental.pallas import tpu as pltpu

BN_EPS = 1e-5


def _interp_matrix_align_corners(n_in: int, n_out: int) -> np.ndarray:
    """1-D linear interpolation matrix (n_out, n_in), align_corners=True."""
    W = np.zeros((n_out, n_in), dtype=np.float32)
    if n_in == 1 or n_out == 1:
        W[:, 0] = 1.0
        return W
    scale = (n_in - 1) / (n_out - 1)
    for p in range(n_out):
        src = p * scale
        i0 = min(int(np.floor(src)), n_in - 1)
        i1 = min(i0 + 1, n_in - 1)
        w = src - i0
        W[p, i0] += 1.0 - w
        W[p, i1] += w
    return W


def _banded_conv_weight(w_dy: np.ndarray, width: int) -> np.ndarray:
    """Banded 'same'-padding weight for one kernel row dy.

    w_dy: (3, Cin, Cout) taps (indexed by dx).  Returns B of shape
    (width*Cin, width*Cout) so that  out_row = in_row @ B  sweeps dx of a 3x3
    conv with the zero width-padding folded into the band (no width halo in the
    data, output already lane-fused as wx*Cout + co).
    """
    _, cin, cout = w_dy.shape
    B = np.zeros((width * cin, width * cout), dtype=np.float32)
    for wx in range(width):
        for dx in range(3):
            xi = wx + dx - 1
            if 0 <= xi < width:
                B[xi * cin:(xi + 1) * cin, wx * cout:(wx + 1) * cout] = w_dy[dx]
    return B


def _make_up_kernel(N, H1, W1, C1, H2, W2, C2, Cmid, Cout, py0, px0, diffY, diffX):
    Hu, Wu = 2 * H1, 2 * W1
    R = N * H2                          # rows of the lane-fused activation slabs
    inv_m = 1.0 / float(N * H2 * W2)    # BN averages over all spatial positions
    f32, bf16 = jnp.float32, jnp.bfloat16

    def kernel(x1_ref, x2_ref, wrn_ref, wck_ref,
               wb1x2_ref, wb1x1_ref, wb2_ref,
               gmat_ref, gmatT_ref, g1_ref, b1_ref, g2_ref, b2_ref,
               out_ref):

        ones_row = jnp.ones((1, R), f32)

        def halo_slabs(v3):
            """v3: (N, H2, W*C) f32 value.  Returns the three dy-shifted row
            slabs (R, W*C); the height halo is in-register zero rows, so there
            is no scratch buffer and no narrow masked halo store."""
            wc = v3.shape[-1]
            zrow = jnp.zeros((N, 1, wc), f32)
            padded = jnp.concatenate([zrow, v3, zrow], axis=1)   # (N, H2+2, wc)
            return [padded[:, dy:dy + H2, :].reshape(R, wc) for dy in range(3)]

        def bn_relu(acc, g_full, b_full):
            """Batch-statistics BN + ReLU on a lane-fused (R, W2*C) f32 slab.

            Row reductions and the per-channel gather / lane broadcast are MXU
            matmuls (ones_row, gmat, gmat^T); variance is two-pass (centered)
            to avoid E[x^2]-E[x]^2 cancellation."""
            colsum = jnp.dot(ones_row, acc, preferred_element_type=f32)              # (1, W2*C)
            mu = jnp.dot(colsum, gmat_ref[...], preferred_element_type=f32) * inv_m  # (1, C)
            mu_full = jnp.dot(mu, gmatT_ref[...], preferred_element_type=f32)        # (1, W2*C)
            cen = acc - mu_full
            colsq = jnp.dot(ones_row, cen * cen, preferred_element_type=f32)         # (1, W2*C)
            var = jnp.dot(colsq, gmat_ref[...], preferred_element_type=f32) * inv_m  # (1, C)
            var_full = jnp.dot(var, gmatT_ref[...], preferred_element_type=f32)      # (1, W2*C)
            sc_full = g_full * lax.rsqrt(var_full + BN_EPS)
            return jnp.maximum(cen * sc_full + b_full, 0.0)

        # ---- bilinear 2x upsample (align_corners=True) as two plain 2-D MXU
        # matmuls; output is already in the lane-fused (N*Hu, Wu*C1) layout.
        t = jnp.dot(wrn_ref[...], x1_ref[...], preferred_element_type=f32)      # (N*Hu, W1*C1)
        up = jnp.dot(t.astype(bf16), wck_ref[...], preferred_element_type=f32)  # (N*Hu, Wu*C1)
        up3 = up.reshape(N, Hu, Wu * C1)

        # F.pad placement inside the (H2, W2) canvas (trace-time branch; no-op
        # when the upsampled map already matches the skip connection size).
        if diffX > 0:
            left = jnp.zeros((N, Hu, px0 * C1), f32)
            right = jnp.zeros((N, Hu, (W2 - Wu - px0) * C1), f32)
            up3 = jnp.concatenate([left, up3, right], axis=2)
        if diffY > 0:
            top = jnp.zeros((N, py0, W2 * C1), f32)
            bot = jnp.zeros((N, H2 - Hu - py0, W2 * C1), f32)
            up3 = jnp.concatenate([top, up3, bot], axis=1)

        # ---- conv1: torch.cat([x2, x1], 1) folded into a weight split; the 3x3
        # conv is 3 dy-shifted banded matmuls per input (K = W2*Cin), whose f32
        # accumulator is already the lane-dense (R, W2*Cmid) slab (no im2col
        # concat, no (M, Cout)-narrow outputs, no relayout).
        x2_slabs = halo_slabs(x2_ref[...])
        up_slabs = halo_slabs(up3)
        acc1 = None
        for dy in range(3):
            for slabs, wref in ((x2_slabs, wb1x2_ref), (up_slabs, wb1x1_ref)):
                part = jnp.dot(slabs[dy].astype(bf16), wref[dy],
                               preferred_element_type=f32)
                acc1 = part if acc1 is None else acc1 + part
        h1 = bn_relu(acc1, g1_ref[...], b1_ref[...])                 # (R, W2*Cmid)

        # ---- conv2 + BN + ReLU; final store is a full-lane (R, W2*Cout) vst.
        h1_slabs = halo_slabs(h1.reshape(N, H2, W2 * Cmid))
        acc2 = None
        for dy in range(3):
            part = jnp.dot(h1_slabs[dy].astype(bf16), wb2_ref[dy],
                           preferred_element_type=f32)
            acc2 = part if acc2 is None else acc2 + part
        out_ref[...] = bn_relu(acc2, g2_ref[...], b2_ref[...]).astype(out_ref.dtype)

    return kernel


def up_forward(x1_nchw, x2_nchw, params):
    """Up.forward(x1, x2).  Inputs/outputs NCHW (PyTorch convention).

    # TODO(synk): channels-last callers should consume the kernel's
    # (N, H2, W2, Cout) output directly and skip these wrapper-side HBM
    # transposes (they can cost as much bandwidth as the kernel itself).
    """
    N, C1, H1, W1 = x1_nchw.shape
    N2, C2, H2, W2 = x2_nchw.shape
    assert N == N2

    w1 = np.asarray(params["w1"], np.float32)    # HWIO (3, 3, C2+C1, Cmid)
    w2 = np.asarray(params["w2"], np.float32)    # HWIO (3, 3, Cmid, Cout)
    assert w1.shape[2] == C1 + C2                # concat([x2, x1], dim=1) order
    Cmid, Cout = w1.shape[3], w2.shape[3]
    assert Cmid == Cout                          # DoubleConv property

    Hu, Wu = 2 * H1, 2 * W1
    diffY, diffX = H2 - Hu, W2 - Wu
    # TODO(synk): negative diff (cropping case of F.pad) is not supported here.
    assert diffY >= 0 and diffX >= 0
    py0, px0 = diffY // 2, diffX // 2

    # ---- host-side (numpy) weight preprocessing ------------------------------
    wr = _interp_matrix_align_corners(H1, Hu)                 # (Hu, H1)
    wc = _interp_matrix_align_corners(W1, Wu)                 # (Wu, W1)
    # TODO(synk): kron(I_N, Wr) wastes MACs for large N; switch the H pass to a
    # non-batched einsum('ph,nhx->npx') contraction in that regime.
    wrn = np.kron(np.eye(N, dtype=np.float32), wr)            # (N*Hu, N*H1)
    wck = np.kron(wc.T, np.eye(C1, dtype=np.float32))         # (W1*C1, Wu*C1)

    # Banded "same"-conv weights, one per kernel row dy (small-C regime only:
    # weight memory is O(W2^2 * Cin * Cout)).
    # TODO(synk): for Cin >= ~128 keep a K=9*Cin im2col matmul with row tiling.
    wb1x2 = np.stack([_banded_conv_weight(w1[dy, :, :C2, :], W2) for dy in range(3)])
    wb1x1 = np.stack([_banded_conv_weight(w1[dy, :, C2:, :], W2) for dy in range(3)])
    wb2 = np.stack([_banded_conv_weight(w2[dy], W2) for dy in range(3)])

    # gmat gathers per-channel BN stats from the lane-fused layout (and gmat^T
    # broadcasts them back) on the MXU; gamma/beta are pre-tiled host-side.
    gmat = np.tile(np.eye(Cout, dtype=np.float32), (W2, 1))   # (W2*C, C)
    g1f = np.tile(np.asarray(params["g1"], np.float32).reshape(1, Cmid), (1, W2))
    b1f = np.tile(np.asarray(params["be1"], np.float32).reshape(1, Cmid), (1, W2))
    g2f = np.tile(np.asarray(params["g2"], np.float32).reshape(1, Cout), (1, W2))
    b2f = np.tile(np.asarray(params["be2"], np.float32).reshape(1, Cout), (1, W2))
    # conv biases are NOT passed: bias followed by batch-statistics BatchNorm is
    # exactly cancelled by the mean subtraction.

    # NHWC, lane-fused (W*C) minor dims.  x1 feeds a bf16 MXU matmul; x2 stays
    # f32 and is rounded to bf16 only at the conv matmul.
    x1f = jnp.transpose(x1_nchw, (0, 2, 3, 1)).reshape(N * H1, W1 * C1).astype(jnp.bfloat16)
    x2f = jnp.transpose(x2_nchw, (0, 2, 3, 1)).reshape(N, H2, W2 * C2).astype(jnp.float32)

    args = (
        x1f, x2f,
        jnp.asarray(wrn, jnp.bfloat16), jnp.asarray(wck, jnp.bfloat16),
        jnp.asarray(wb1x2, jnp.bfloat16), jnp.asarray(wb1x1, jnp.bfloat16),
        jnp.asarray(wb2, jnp.bfloat16),
        jnp.asarray(gmat, jnp.float32), jnp.asarray(gmat.T, jnp.float32),
        jnp.asarray(g1f, jnp.float32), jnp.asarray(b1f, jnp.float32),
        jnp.asarray(g2f, jnp.float32), jnp.asarray(b2f, jnp.float32),
    )

    kernel = _make_up_kernel(N, H1, W1, C1, H2, W2, C2, Cmid, Cout,
                             py0, px0, diffY, diffX)

    # VMEM limit from the actual resident footprint (inputs + weights + output)
    # with headroom for compiler temporaries, clamped to 75% of this chip's
    # VMEM (generation-aware: 64 MiB on v7x, 128 MiB on v5e/v6e).
    nbytes = sum(int(np.prod(a.shape)) * a.dtype.itemsize for a in args)
    nbytes += N * H2 * W2 * Cout * 4
    try:
        vmem_cap = int(pltpu.get_tpu_info().vmem_capacity_bytes)
    except Exception:
        vmem_cap = 64 * 1024 * 1024
    vmem_limit = int(min(0.75 * vmem_cap, max(32 * 1024 * 1024, 8 * nbytes)))

    vmem = pl.BlockSpec(memory_space=pltpu.MemorySpace.VMEM)
    out2d = pl.pallas_call(
        kernel,
        out_shape=jax.ShapeDtypeStruct((N * H2, W2 * Cout), jnp.float32),
        in_specs=[vmem] * len(args),
        out_specs=vmem,
        compiler_params=pltpu.CompilerParams(vmem_limit_bytes=vmem_limit),
    )(*args)

    # lane-dense (N*H2, W2*Cout) slab -> NCHW
    return jnp.transpose(out2d.reshape(N, H2, W2, Cout), (0, 3, 1, 2))


def init_params(key, in_channels, out_channels):
    """Deterministic parameter init for DoubleConv(in_channels, out_channels)."""
    k1, k2 = jax.random.split(key)
    # conv weights in HWIO layout: (kh, kw, Cin, Cout)
    w1 = jax.random.normal(k1, (3, 3, in_channels, out_channels), jnp.float32)
    w1 = w1 / np.sqrt(9.0 * in_channels)
    w2 = jax.random.normal(k2, (3, 3, out_channels, out_channels), jnp.float32)
    w2 = w2 / np.sqrt(9.0 * out_channels)
    zeros = jnp.zeros((1, out_channels), jnp.float32)
    ones = jnp.ones((1, out_channels), jnp.float32)
    # b1/b2 kept only for interface parity with nn.Conv2d(bias=True); they are
    # mathematically cancelled by the batch-statistics BatchNorm that follows.
    return dict(w1=w1, b1=zeros, g1=ones, be1=zeros,
                w2=w2, b2=zeros, g2=ones, be2=zeros)


if __name__ == "__main__":
    key = jax.random.PRNGKey(0)
    kx1, kx2, kp = jax.random.split(key, 3)

    # small shapes consistent with Up: x1 is the low-res feature map, x2 the skip
    N, C1, C2 = 2, 4, 4
    H1 = W1 = 8
    H2 = W2 = 16
    out_channels = 8

    x1 = jax.random.normal(kx1, (N, C1, H1, W1), jnp.float32)   # NCHW
    x2 = jax.random.normal(kx2, (N, C2, H2, W2), jnp.float32)   # NCHW
    params = init_params(kp, in_channels=C1 + C2, out_channels=out_channels)

    y = up_forward(x1, x2, params)
    jax.block_until_ready(y)
    assert y.shape == (N, out_channels, H2, W2), y.shape
    print("KERNEL_OK")
</pallas_src>

<mosaic_0001>
module attributes {stable_mosaic.version = 11 : i64} {
  func.func @kernel(%arg0: memref<16x32xbf16, #tpu.memory_space<vmem>>, %arg1: memref<2x16x64xf32, #tpu.memory_space<vmem>>, %arg2: memref<32x16xbf16, #tpu.memory_space<vmem>>, %arg3: memref<32x64xbf16, #tpu.memory_space<vmem>>, %arg4: memref<3x64x128xbf16, #tpu.memory_space<vmem>>, %arg5: memref<3x64x128xbf16, #tpu.memory_space<vmem>>, %arg6: memref<3x128x128xbf16, #tpu.memory_space<vmem>>, %arg7: memref<128x8xf32, #tpu.memory_space<vmem>>, %arg8: memref<8x128xf32, #tpu.memory_space<vmem>>, %arg9: memref<1x128xf32, #tpu.memory_space<vmem>>, %arg10: memref<1x128xf32, #tpu.memory_space<vmem>>, %arg11: memref<1x128xf32, #tpu.memory_space<vmem>>, %arg12: memref<1x128xf32, #tpu.memory_space<vmem>>, %arg13: memref<32x128xf32, #tpu.memory_space<vmem>>) attributes {dimension_semantics = [], scalar_prefetch = 0 : i64, scratch_operands = 0 : i64, tpu.core_type = #tpu.core_type<tc>} {
    %cst = arith.constant 1.000000e+00 : f32
    %0 = vector.broadcast %cst : f32 to vector<1x32xf32>
    %c0 = arith.constant 0 : index
    %c0_0 = arith.constant 0 : index
    %1 = vector.load %arg2[%c0, %c0_0] : memref<32x16xbf16, #tpu.memory_space<vmem>>, vector<32x16xbf16>
    %c0_1 = arith.constant 0 : index
    %c0_2 = arith.constant 0 : index
    %2 = vector.load %arg0[%c0_1, %c0_2] : memref<16x32xbf16, #tpu.memory_space<vmem>>, vector<16x32xbf16>
    %cst_3 = arith.constant dense<0.000000e+00> : vector<32x32xf32>
    %3 = tpu.matmul %1, %2, %cst_3 {dimension_numbers = #tpu.dot_dimension_numbers<[1], [0], [0], [1], [0, 0, 1, 1], [], []>} : vector<32x16xbf16>, vector<16x32xbf16>, vector<32x32xf32> -> vector<32x32xf32>
    %4 = arith.truncf %3 : vector<32x32xf32> to vector<32x32xbf16>
    %c0_4 = arith.constant 0 : index
    %c0_5 = arith.constant 0 : index
    %5 = vector.load %arg3[%c0_4, %c0_5] : memref<32x64xbf16, #tpu.memory_space<vmem>>, vector<32x64xbf16>
    %cst_6 = arith.constant dense<0.000000e+00> : vector<32x64xf32>
    %6 = tpu.matmul %4, %5, %cst_6 {dimension_numbers = #tpu.dot_dimension_numbers<[1], [0], [0], [1], [0, 0, 1, 1], [], []>} : vector<32x32xbf16>, vector<32x64xbf16>, vector<32x64xf32> -> vector<32x64xf32>
    %7 = vector.shape_cast %6 : vector<32x64xf32> to vector<2x16x64xf32>
    %c0_7 = arith.constant 0 : index
    %c0_8 = arith.constant 0 : index
    %c0_9 = arith.constant 0 : index
    %8 = vector.load %arg1[%c0_7, %c0_8, %c0_9] : memref<2x16x64xf32, #tpu.memory_space<vmem>>, vector<2x16x64xf32>
    %cst_10 = arith.constant 0.000000e+00 : f32
    %9 = vector.broadcast %cst_10 : f32 to vector<2x1x64xf32>
    %10 = tpu.concatenate %9, %8, %9 in 1 : vector<2x1x64xf32>, vector<2x16x64xf32>, vector<2x1x64xf32> -> vector<2x18x64xf32>
    %11 = vector.extract_strided_slice %10 {offsets = [0, 0, 0], sizes = [2, 16, 64], strides = [1, 1, 1]} : vector<2x18x64xf32> to vector<2x16x64xf32>
    %12 = vector.shape_cast %11 : vector<2x16x64xf32> to vector<32x64xf32>
    %13 = vector.extract_strided_slice %10 {offsets = [0, 1, 0], sizes = [2, 16, 64], strides = [1, 1, 1]} : vector<2x18x64xf32> to vector<2x16x64xf32>
    %14 = vector.shape_cast %13 : vector<2x16x64xf32> to vector<32x64xf32>
    %15 = vector.extract_strided_slice %10 {offsets = [0, 2, 0], sizes = [2, 16, 64], strides = [1, 1, 1]} : vector<2x18x64xf32> to vector<2x16x64xf32>
    %16 = vector.shape_cast %15 : vector<2x16x64xf32> to vector<32x64xf32>
    %cst_11 = arith.constant 0.000000e+00 : f32
    %17 = vector.broadcast %cst_11 : f32 to vector<2x1x64xf32>
    %18 = tpu.concatenate %17, %7, %17 in 1 : vector<2x1x64xf32>, vector<2x16x64xf32>, vector<2x1x64xf32> -> vector<2x18x64xf32>
    %19 = vector.extract_strided_slice %18 {offsets = [0, 0, 0], sizes = [2, 16, 64], strides = [1, 1, 1]} : vector<2x18x64xf32> to vector<2x16x64xf32>
    %20 = vector.shape_cast %19 : vector<2x16x64xf32> to vector<32x64xf32>
    %21 = vector.extract_strided_slice %18 {offsets = [0, 1, 0], sizes = [2, 16, 64], strides = [1, 1, 1]} : vector<2x18x64xf32> to vector<2x16x64xf32>
    %22 = vector.shape_cast %21 : vector<2x16x64xf32> to vector<32x64xf32>
    %23 = vector.extract_strided_slice %18 {offsets = [0, 2, 0], sizes = [2, 16, 64], strides = [1, 1, 1]} : vector<2x18x64xf32> to vector<2x16x64xf32>
    %24 = vector.shape_cast %23 : vector<2x16x64xf32> to vector<32x64xf32>
    %25 = arith.truncf %12 : vector<32x64xf32> to vector<32x64xbf16>
    %c0_12 = arith.constant 0 : index
    %c0_13 = arith.constant 0 : index
    %c0_14 = arith.constant 0 : index
    %26 = vector.load %arg4[%c0_12, %c0_13, %c0_14] : memref<3x64x128xbf16, #tpu.memory_space<vmem>>, vector<1x64x128xbf16>
    %27 = vector.shape_cast %26 : vector<1x64x128xbf16> to vector<64x128xbf16>
    %cst_15 = arith.constant dense<0.000000e+00> : vector<32x128xf32>
    %28 = tpu.matmul %25, %27, %cst_15 {dimension_numbers = #tpu.dot_dimension_numbers<[1], [0], [0], [1], [0, 0, 1, 1], [], []>} : vector<32x64xbf16>, vector<64x128xbf16>, vector<32x128xf32> -> vector<32x128xf32>
    %29 = arith.truncf %20 : vector<32x64xf32> to vector<32x64xbf16>
    %c0_16 = arith.constant 0 : index
    %c0_17 = arith.constant 0 : index
    %c0_18 = arith.constant 0 : index
    %30 = vector.load %arg5[%c0_16, %c0_17, %c0_18] : memref<3x64x128xbf16, #tpu.memory_space<vmem>>, vector<1x64x128xbf16>
    %31 = vector.shape_cast %30 : vector<1x64x128xbf16> to vector<64x128xbf16>
    %cst_19 = arith.constant dense<0.000000e+00> : vector<32x128xf32>
    %32 = tpu.matmul %29, %31, %cst_19 {dimension_numbers = #tpu.dot_dimension_numbers<[1], [0], [0], [1], [0, 0, 1, 1], [], []>} : vector<32x64xbf16>, vector<64x128xbf16>, vector<32x128xf32> -> vector<32x128xf32>
    %33 = arith.addf %28, %32 : vector<32x128xf32>
    %34 = arith.truncf %14 : vector<32x64xf32> to vector<32x64xbf16>
    %c1 = arith.constant 1 : index
    %c0_20 = arith.constant 0 : index
    %c0_21 = arith.constant 0 : index
    %35 = vector.load %arg4[%c1, %c0_20, %c0_21] : memref<3x64x128xbf16, #tpu.memory_space<vmem>>, vector<1x64x128xbf16>
    %36 = vector.shape_cast %35 : vector<1x64x128xbf16> to vector<64x128xbf16>
    %cst_22 = arith.constant dense<0.000000e+00> : vector<32x128xf32>
    %37 = tpu.matmul %34, %36, %cst_22 {dimension_numbers = #tpu.dot_dimension_numbers<[1], [0], [0], [1], [0, 0, 1, 1], [], []>} : vector<32x64xbf16>, vector<64x128xbf16>, vector<32x128xf32> -> vector<32x128xf32>
    %38 = arith.addf %33, %37 : vector<32x128xf32>
    %39 = arith.truncf %22 : vector<32x64xf32> to vector<32x64xbf16>
    %c1_23 = arith.constant 1 : index
    %c0_24 = arith.constant 0 : index
    %c0_25 = arith.constant 0 : index
    %40 = vector.load %arg5[%c1_23, %c0_24, %c0_25] : memref<3x64x128xbf16, #tpu.memory_space<vmem>>, vector<1x64x128xbf16>
    %41 = vector.shape_cast %40 : vector<1x64x128xbf16> to vector<64x128xbf16>
    %cst_26 = arith.constant dense<0.000000e+00> : vector<32x128xf32>
    %42 = tpu.matmul %39, %41, %cst_26 {dimension_numbers = #tpu.dot_dimension_numbers<[1], [0], [0], [1], [0, 0, 1, 1], [], []>} : vector<32x64xbf16>, vector<64x128xbf16>, vector<32x128xf32> -> vector<32x128xf32>
    %43 = arith.addf %38, %42 : vector<32x128xf32>
    %44 = arith.truncf %16 : vector<32x64xf32> to vector<32x64xbf16>
    %c2 = arith.constant 2 : index
    %c0_27 = arith.constant 0 : index
    %c0_28 = arith.constant 0 : index
    %45 = vector.load %arg4[%c2, %c0_27, %c0_28] : memref<3x64x128xbf16, #tpu.memory_space<vmem>>, vector<1x64x128xbf16>
    %46 = vector.shape_cast %45 : vector<1x64x128xbf16> to vector<64x128xbf16>
    %cst_29 = arith.constant dense<0.000000e+00> : vector<32x128xf32>
    %47 = tpu.matmul %44, %46, %cst_29 {dimension_numbers = #tpu.dot_dimension_numbers<[1], [0], [0], [1], [0, 0, 1, 1], [], []>} : vector<32x64xbf16>, vector<64x128xbf16>, vector<32x128xf32> -> vector<32x128xf32>
    %48 = arith.addf %43, %47 : vector<32x128xf32>
    %49 = arith.truncf %24 : vector<32x64xf32> to vector<32x64xbf16>
    %c2_30 = arith.constant 2 : index
    %c0_31 = arith.constant 0 : index
    %c0_32 = arith.constant 0 : index
    %50 = vector.load %arg5[%c2_30, %c0_31, %c0_32] : memref<3x64x128xbf16, #tpu.memory_space<vmem>>, vector<1x64x128xbf16>
    %51 = vector.shape_cast %50 : vector<1x64x128xbf16> to vector<64x128xbf16>
    %cst_33 = arith.constant dense<0.000000e+00> : vector<32x128xf32>
    %52 = tpu.matmul %49, %51, %cst_33 {dimension_numbers = #tpu.dot_dimension_numbers<[1], [0], [0], [1], [0, 0, 1, 1], [], []>} : vector<32x64xbf16>, vector<64x128xbf16>, vector<32x128xf32> -> vector<32x128xf32>
    %53 = arith.addf %48, %52 : vector<32x128xf32>
    %c0_34 = arith.constant 0 : index
    %c0_35 = arith.constant 0 : index
    %54 = vector.load %arg9[%c0_34, %c0_35] : memref<1x128xf32, #tpu.memory_space<vmem>>, vector<1x128xf32>
    %c0_36 = arith.constant 0 : index
    %c0_37 = arith.constant 0 : index
    %55 = vector.load %arg10[%c0_36, %c0_37] : memref<1x128xf32, #tpu.memory_space<vmem>>, vector<1x128xf32>
    %cst_38 = arith.constant dense<0.000000e+00> : vector<1x128xf32>
    %56 = tpu.matmul %0, %53, %cst_38 {dimension_numbers = #tpu.dot_dimension_numbers<[1], [0], [0], [1], [0, 0, 1, 1], [], []>} : vector<1x32xf32>, vector<32x128xf32>, vector<1x128xf32> -> vector<1x128xf32>
    %c0_39 = arith.constant 0 : index
    %c0_40 = arith.constant 0 : index
    %57 = vector.load %arg7[%c0_39, %c0_40] : memref<128x8xf32, #tpu.memory_space<vmem>>, vector<128x8xf32>
    %cst_41 = arith.constant dense<0.000000e+00> : vector<1x8xf32>
    %58 = tpu.matmul %56, %57, %cst_41 {dimension_numbers = #tpu.dot_dimension_numbers<[1], [0], [0], [1], [0, 0, 1, 1], [], []>} : vector<1x128xf32>, vector<128x8xf32>, vector<1x8xf32> -> vector<1x8xf32>
    %cst_42 = arith.constant 0.001953125 : f32
    %59 = vector.broadcast %cst_42 : f32 to vector<1x8xf32>
    %60 = arith.mulf %58, %59 : vector<1x8xf32>
    %c0_43 = arith.constant 0 : index
    %c0_44 = arith.constant 0 : index
    %61 = vector.load %arg8[%c0_43, %c0_44] : memref<8x128xf32, #tpu.memory_space<vmem>>, vector<8x128xf32>
    %cst_45 = arith.constant dense<0.000000e+00> : vector<1x128xf32>
    %62 = tpu.matmul %60, %61, %cst_45 {dimension_numbers = #tpu.dot_dimension_numbers<[1], [0], [0], [1], [0, 0, 1, 1], [], []>} : vector<1x8xf32>, vector<8x128xf32>, vector<1x128xf32> -> vector<1x128xf32>
    %63 = vector.broadcast %62 : vector<1x128xf32> to vector<32x128xf32>
    %64 = arith.subf %53, %63 : vector<32x128xf32>
    %65 = arith.mulf %64, %64 : vector<32x128xf32>
    %cst_46 = arith.constant dense<0.000000e+00> : vector<1x128xf32>
    %66 = tpu.matmul %0, %65, %cst_46 {dimension_numbers = #tpu.dot_dimension_numbers<[1], [0], [0], [1], [0, 0, 1, 1], [], []>} : vector<1x32xf32>, vector<32x128xf32>, vector<1x128xf32> -> vector<1x128xf32>
    %c0_47 = arith.constant 0 : index
    %c0_48 = arith.constant 0 : index
    %67 = vector.load %arg7[%c0_47, %c0_48] : memref<128x8xf32, #tpu.memory_space<vmem>>, vector<128x8xf32>
    %cst_49 = arith.constant dense<0.000000e+00> : vector<1x8xf32>
    %68 = tpu.matmul %66, %67, %cst_49 {dimension_numbers = #tpu.dot_dimension_numbers<[1], [0], [0], [1], [0, 0, 1, 1], [], []>} : vector<1x128xf32>, vector<128x8xf32>, vector<1x8xf32> -> vector<1x8xf32>
    %cst_50 = arith.constant 0.001953125 : f32
    %69 = vector.broadcast %cst_50 : f32 to vector<1x8xf32>
    %70 = arith.mulf %68, %69 : vector<1x8xf32>
    %c0_51 = arith.constant 0 : index
    %c0_52 = arith.constant 0 : index
    %71 = vector.load %arg8[%c0_51, %c0_52] : memref<8x128xf32, #tpu.memory_space<vmem>>, vector<8x128xf32>
    %cst_53 = arith.constant dense<0.000000e+00> : vector<1x128xf32>
    %72 = tpu.matmul %70, %71, %cst_53 {dimension_numbers = #tpu.dot_dimension_numbers<[1], [0], [0], [1], [0, 0, 1, 1], [], []>} : vector<1x8xf32>, vector<8x128xf32>, vector<1x128xf32> -> vector<1x128xf32>
    %cst_54 = arith.constant 9.99999974E-6 : f32
    %73 = vector.broadcast %cst_54 : f32 to vector<1x128xf32>
    %74 = arith.addf %72, %73 : vector<1x128xf32>
    %75 = math.rsqrt %74 : vector<1x128xf32>
    %76 = arith.mulf %54, %75 : vector<1x128xf32>
    %77 = vector.broadcast %76 : vector<1x128xf32> to vector<32x128xf32>
    %78 = arith.mulf %64, %77 : vector<32x128xf32>
    %79 = vector.broadcast %55 : vector<1x128xf32> to vector<32x128xf32>
    %80 = arith.addf %78, %79 : vector<32x128xf32>
    %cst_55 = arith.constant 0.000000e+00 : f32
    %81 = vector.broadcast %cst_55 : f32 to vector<32x128xf32>
    %82 = arith.maximumf %80, %81 : vector<32x128xf32>
    %83 = vector.shape_cast %82 : vector<32x128xf32> to vector<2x16x128xf32>
    %cst_56 = arith.constant 0.000000e+00 : f32
    %84 = vector.broadcast %cst_56 : f32 to vector<2x1x128xf32>
    %85 = tpu.concatenate %84, %83, %84 in 1 : vector<2x1x128xf32>, vector<2x16x128xf32>, vector<2x1x128xf32> -> vector<2x18x128xf32>
    %86 = vector.extract_strided_slice %85 {offsets = [0, 0, 0], sizes = [2, 16, 128], strides = [1, 1, 1]} : vector<2x18x128xf32> to vector<2x16x128xf32>
    %87 = vector.shape_cast %86 : vector<2x16x128xf32> to vector<32x128xf32>
    %88 = vector.extract_strided_slice %85 {offsets = [0, 1, 0], sizes = [2, 16, 128], strides = [1, 1, 1]} : vector<2x18x128xf32> to vector<2x16x128xf32>
    %89 = vector.shape_cast %88 : vector<2x16x128xf32> to vector<32x128xf32>
    %90 = vector.extract_strided_slice %85 {offsets = [0, 2, 0], sizes = [2, 16, 128], strides = [1, 1, 1]} : vector<2x18x128xf32> to vector<2x16x128xf32>
    %91 = vector.shape_cast %90 : vector<2x16x128xf32> to vector<32x128xf32>
    %92 = arith.truncf %87 : vector<32x128xf32> to vector<32x128xbf16>
    %c0_57 = arith.constant 0 : index
    %c0_58 = arith.constant 0 : index
    %c0_59 = arith.constant 0 : index
    %93 = vector.load %arg6[%c0_57, %c0_58, %c0_59] : memref<3x128x128xbf16, #tpu.memory_space<vmem>>, vector<1x128x128xbf16>
    %94 = vector.shape_cast %93 : vector<1x128x128xbf16> to vector<128x128xbf16>
    %cst_60 = arith.constant dense<0.000000e+00> : vector<32x128xf32>
    %95 = tpu.matmul %92, %94, %cst_60 {dimension_numbers = #tpu.dot_dimension_numbers<[1], [0], [0], [1], [0, 0, 1, 1], [], []>} : vector<32x128xbf16>, vector<128x128xbf16>, vector<32x128xf32> -> vector<32x128xf32>
    %96 = arith.truncf %89 : vector<32x128xf32> to vector<32x128xbf16>
    %c1_61 = arith.constant 1 : index
    %c0_62 = arith.constant 0 : index
    %c0_63 = arith.constant 0 : index
    %97 = vector.load %arg6[%c1_61, %c0_62, %c0_63] : memref<3x128x128xbf16, #tpu.memory_space<vmem>>, vector<1x128x128xbf16>
    %98 = vector.shape_cast %97 : vector<1x128x128xbf16> to vector<128x128xbf16>
    %cst_64 = arith.constant dense<0.000000e+00> : vector<32x128xf32>
    %99 = tpu.matmul %96, %98, %cst_64 {dimension_numbers = #tpu.dot_dimension_numbers<[1], [0], [0], [1], [0, 0, 1, 1], [], []>} : vector<32x128xbf16>, vector<128x128xbf16>, vector<32x128xf32> -> vector<32x128xf32>
    %100 = arith.addf %95, %99 : vector<32x128xf32>
    %101 = arith.truncf %91 : vector<32x128xf32> to vector<32x128xbf16>
    %c2_65 = arith.constant 2 : index
    %c0_66 = arith.constant 0 : index
    %c0_67 = arith.constant 0 : index
    %102 = vector.load %arg6[%c2_65, %c0_66, %c0_67] : memref<3x128x128xbf16, #tpu.memory_space<vmem>>, vector<1x128x128xbf16>
    %103 = vector.shape_cast %102 : vector<1x128x128xbf16> to vector<128x128xbf16>
    %cst_68 = arith.constant dense<0.000000e+00> : vector<32x128xf32>
    %104 = tpu.matmul %101, %103, %cst_68 {dimension_numbers = #tpu.dot_dimension_numbers<[1], [0], [0], [1], [0, 0, 1, 1], [], []>} : vector<32x128xbf16>, vector<128x128xbf16>, vector<32x128xf32> -> vector<32x128xf32>
    %105 = arith.addf %100, %104 : vector<32x128xf32>
    %c0_69 = arith.constant 0 : index
    %c0_70 = arith.constant 0 : index
    %106 = vector.load %arg11[%c0_69, %c0_70] : memref<1x128xf32, #tpu.memory_space<vmem>>, vector<1x128xf32>
    %c0_71 = arith.constant 0 : index
    %c0_72 = arith.constant 0 : index
    %107 = vector.load %arg12[%c0_71, %c0_72] : memref<1x128xf32, #tpu.memory_space<vmem>>, vector<1x128xf32>
    %cst_73 = arith.constant dense<0.000000e+00> : vector<1x128xf32>
    %108 = tpu.matmul %0, %105, %cst_73 {dimension_numbers = #tpu.dot_dimension_numbers<[1], [0], [0], [1], [0, 0, 1, 1], [], []>} : vector<1x32xf32>, vector<32x128xf32>, vector<1x128xf32> -> vector<1x128xf32>
    %c0_74 = arith.constant 0 : index
    %c0_75 = arith.constant 0 : index
    %109 = vector.load %arg7[%c0_74, %c0_75] : memref<128x8xf32, #tpu.memory_space<vmem>>, vector<128x8xf32>
    %cst_76 = arith.constant dense<0.000000e+00> : vector<1x8xf32>
    %110 = tpu.matmul %108, %109, %cst_76 {dimension_numbers = #tpu.dot_dimension_numbers<[1], [0], [0], [1], [0, 0, 1, 1], [], []>} : vector<1x128xf32>, vector<128x8xf32>, vector<1x8xf32> -> vector<1x8xf32>
    %cst_77 = arith.constant 0.001953125 : f32
    %111 = vector.broadcast %cst_77 : f32 to vector<1x8xf32>
    %112 = arith.mulf %110, %111 : vector<1x8xf32>
    %c0_78 = arith.constant 0 : index
    %c0_79 = arith.constant 0 : index
    %113 = vector.load %arg8[%c0_78, %c0_79] : memref<8x128xf32, #tpu.memory_space<vmem>>, vector<8x128xf32>
    %cst_80 = arith.constant dense<0.000000e+00> : vector<1x128xf32>
    %114 = tpu.matmul %112, %113, %cst_80 {dimension_numbers = #tpu.dot_dimension_numbers<[1], [0], [0], [1], [0, 0, 1, 1], [], []>} : vector<1x8xf32>, vector<8x128xf32>, vector<1x128xf32> -> vector<1x128xf32>
    %115 = vector.broadcast %114 : vector<1x128xf32> to vector<32x128xf32>
    %116 = arith.subf %105, %115 : vector<32x128xf32>
    %117 = arith.mulf %116, %116 : vector<32x128xf32>
    %cst_81 = arith.constant dense<0.000000e+00> : vector<1x128xf32>
    %118 = tpu.matmul %0, %117, %cst_81 {dimension_numbers = #tpu.dot_dimension_numbers<[1], [0], [0], [1], [0, 0, 1, 1], [], []>} : vector<1x32xf32>, vector<32x128xf32>, vector<1x128xf32> -> vector<1x128xf32>
    %c0_82 = arith.constant 0 : index
    %c0_83 = arith.constant 0 : index
    %119 = vector.load %arg7[%c0_82, %c0_83] : memref<128x8xf32, #tpu.memory_space<vmem>>, vector<128x8xf32>
    %cst_84 = arith.constant dense<0.000000e+00> : vector<1x8xf32>
    %120 = tpu.matmul %118, %119, %cst_84 {dimension_numbers = #tpu.dot_dimension_numbers<[1], [0], [0], [1], [0, 0, 1, 1], [], []>} : vector<1x128xf32>, vector<128x8xf32>, vector<1x8xf32> -> vector<1x8xf32>
    %cst_85 = arith.constant 0.001953125 : f32
    %121 = vector.broadcast %cst_85 : f32 to vector<1x8xf32>
    %122 = arith.mulf %120, %121 : vector<1x8xf32>
    %c0_86 = arith.constant 0 : index
    %c0_87 = arith.constant 0 : index
    %123 = vector.load %arg8[%c0_86, %c0_87] : memref<8x128xf32, #tpu.memory_space<vmem>>, vector<8x128xf32>
    %cst_88 = arith.constant dense<0.000000e+00> : vector<1x128xf32>
    %124 = tpu.matmul %122, %123, %cst_88 {dimension_numbers = #tpu.dot_dimension_numbers<[1], [0], [0], [1], [0, 0, 1, 1], [], []>} : vector<1x8xf32>, vector<8x128xf32>, vector<1x128xf32> -> vector<1x128xf32>
    %cst_89 = arith.constant 9.99999974E-6 : f32
    %125 = vector.broadcast %cst_89 : f32 to vector<1x128xf32>
    %126 = arith.addf %124, %125 : vector<1x128xf32>
    %127 = math.rsqrt %126 : vector<1x128xf32>
    %128 = arith.mulf %106, %127 : vector<1x128xf32>
    %129 = vector.broadcast %128 : vector<1x128xf32> to vector<32x128xf32>
    %130 = arith.mulf %116, %129 : vector<32x128xf32>
    %131 = vector.broadcast %107 : vector<1x128xf32> to vector<32x128xf32>
    %132 = arith.addf %130, %131 : vector<32x128xf32>
    %cst_90 = arith.constant 0.000000e+00 : f32
    %133 = vector.broadcast %cst_90 : f32 to vector<32x128xf32>
    %134 = arith.maximumf %132, %133 : vector<32x128xf32>
    %c0_91 = arith.constant 0 : index
    %c0_92 = arith.constant 0 : index
    %135 = vector.load %arg13[%c0_91, %c0_92] : memref<32x128xf32, #tpu.memory_space<vmem>>, vector<32x128xf32>
    tpu.vector_store %arg13[%c0_91, %c0_92], %134 {strides = array<i32>} : memref<32x128xf32, #tpu.memory_space<vmem>>, vector<32x128xf32>,
    return
  }
}

</mosaic_0001>

<bundles_post_ra>
// kernel: tpu_custom_call.1
= control target key start
LH: loop header
LB: loop body
LE: loop exit
PB: predicated region body
PF: predicated region fallthrough
CT: control target
= control target key end

     0   :  { %18 = vsyncpa [#allocation3], 0  ;;  %s3722_s0 = inlined_call_operand.vmem [shape: bf16[16,32], index: 0, kind: input, shape index: {}]   ;;  %s3723_s1 = inlined_call_operand.vmem [shape: f32[2,16,64], index: 1, kind: input, shape index: {}]   ;;  %s3724_s2 = inlined_call_operand.vmem [shape: bf16[32,16], index: 2, kind: input, shape index: {}]   ;;  %s3725_s3 = inlined_call_operand.vmem [shape: bf16[32,64], index: 3, kind: input, shape index: {}]   ;;  %s3726_s4 = inlined_call_operand.vmem [shape: bf16[3,64,128], index: 4, kind: input, shape index: {}]   ;;  %s3727_s5 = inlined_call_operand.hbm [shape: bf16[3,64,128], index: 5, kind: input, shape index: {}]   ;;  %s3728_s6 = inlined_call_operand.hbm [shape: bf16[3,128,128], index: 6, kind: input, shape index: {}]   ;;  %s3729_s7 = inlined_call_operand.vmem [shape: f32[128,8], index: 7, kind: input, shape index: {}]   ;;  %s3730_s8 = inlined_call_operand.vmem [shape: f32[8,128], index: 8, kind: input, shape index: {}]   ;;  %s3731_s9 = inlined_call_operand.vmem [shape: f32[1,128], index: 9, kind: input, shape index: {}]   ;;  %s3732_s10 = inlined_call_operand.vmem [shape: f32[1,128], index: 10, kind: input, shape index: {}]   ;;  %s3733_s11 = inlined_call_operand.vmem [shape: f32[1,128], index: 11, kind: input, shape index: {}]   ;;  %s3734_s12 = inlined_call_operand.vmem [shape: f32[1,128], index: 12, kind: input, shape index: {}]   ;;  %s3735_s13 = inlined_call_operand.hbm [shape: f32[32,128], index: 13, kind: output, shape index: {}]  }
   0x1   :  { %19 = vsyncpa [#allocation6], 0 }
   0x2   :  { %20 = vsyncpa [#allocation4], 0  ;;  %s3185_s25 = smov [#allocation2]   ;;  %s3113_s29 = scalar_lea.hbm %s3727_s5, 1536 }
   0x3   :  { %s36_s26 = sshll.u32 %s3185_s25, 4  ;;  %p3114_p0 = scmp.ne.s32.totalorder %s3727_s5, %s3113_s29  ;;  %s37_s26 = int_to_ptr.vmem [resolvable:$true] %s36_s26 }
   0x4   :  { %p3117_p1 = scmp.lt.u32.totalorder %s3113_s29, %s3727_s5 }
   0x6   :  { %p3119_p2 = pnand %p3117_p1, %p3114_p0 }
   0x8   :  { %3122 = shalt.err (!%p3119_p2)
}
   0x9   :  { %s3123_s17 = scalar_lea.vmem %s37_s26, 1536  ;;  %p3128_p4 = scmp.lt.s32.totalorder %s37_s26, %s37_s26 }
   0xa   :  { %p3124_p3 = scmp.ne.s32.totalorder %s37_s26, %s3123_s17  ;;  %p3129_p5 = scmp.lt.s32.totalorder %s3123_s17, %s3123_s17 }
   0xc   :  { %p3130_p6 = por %p3129_p5, %p3128_p4 }
   0xe   :  { %p3131_p7 = pnand %p3130_p6, %p3124_p3 }
  0x10   :  { %3134 = shalt.err (!%p3131_p7)
}
  0x11   :  { %s3186_s18 = smov 64   ;;  %s3187_s19 = smov 4  }
  0x12   :  { %42 = dma.hbm_to_vmem [thread:$0]  %s3727_s5, 1536, %s37_s26, [#allocation3], %s3186_s18, %s3186_s18, %s3187_s19  }
  0x13   :  { %s3188_s22 = smov [#allocation5]   ;;  %s3135_s27 = scalar_lea.hbm %s3728_s6, 3072 }
  0x14   :  { %s48_s23 = sshll.u32 %s3188_s22, 4  ;;  %p3136_p8 = scmp.ne.s32.totalorder %s3728_s6, %s3135_s27  ;;  %s49_s23 = int_to_ptr.vmem [resolvable:$true] %s48_s23 }
  0x15   :  { %p3139_p9 = scmp.lt.u32.totalorder %s3135_s27, %s3728_s6 }
  0x17   :  { %p3141_p10 = pnand %p3139_p9, %p3136_p8 }
  0x19   :  { %3144 = shalt.err (!%p3141_p10)
}
  0x1a   :  { %s3145_s15 = scalar_lea.vmem %s49_s23, 3072  ;;  %p3150_p12 = scmp.lt.s32.totalorder %s49_s23, %s49_s23 }
  0x1b   :  { %p3146_p11 = scmp.ne.s32.totalorder %s49_s23, %s3145_s15  ;;  %p3151_p13 = scmp.lt.s32.totalorder %s3145_s15, %s3145_s15 }
  0x1d   :  { %p3152_p0 = por %p3151_p13, %p3150_p12 }
  0x1f   :  { %p3153_p1 = pnand %p3152_p0, %p3146_p11 }
  0x21   :  { %3156 = shalt.err (!%p3153_p1)
}
  0x22   :  { %54 = dma.hbm_to_vmem [thread:$0]  %s3728_s6, 3072, %s49_s23, [#allocation6], %s3186_s18, %s3186_s18, %s3187_s19  }
  0x23   :  { %3179 = dma.done.wait [#allocation3], 1536  }
  0x24   :  { %3180 = vsyncadd [#allocation3], 4294965760 }
  0x25   :  { %3181 = dma.done.wait [#allocation6], 3072  }
  0x26   :  { %3182 = vsyncadd [#allocation6], 4294964224  ;;  %v3056_v0 = vld [vmem:[%s3722_s0] sm:$0xff]   ;;  %vm96_vm0 = vcmask 130048   ;;  %v3058_v2 = vld [vmem:[%s3724_s2 + $0x8] sm:$0xff]   ;;  %vm170_vm1 = vcmask 261120  }
  0x27   :  { %v3057_v1 = vld [vmem:[%s3724_s2] sm:$0xff]   ;;  %2546 = vmatprep.subr.bf16.mxu0 %v3056_v0  ;;  %v3060_v4 = vld [vmem:[%s3725_s3 + $0x8] sm:$0xff]   ;;  %v3063_v13 = vld [vmem:[#allocation2 + $0x10] sm:$0xff]   ;;  %vm234_vm2 = vcmask 1040384   ;;  %vm255_vm3 = vcmask 1046528   ;;  %vm270_vm4 = vcmask 1045504  }
  0x28   :  { %2547 = vmatpush3.bf16.msra.mxu0 %v3056_v0  ;;  %2548 = vmatprep.mubr.msk.bf16.mxu0 %vm96_vm0, %v3057_v1  ;;  %v3059_v3 = vld [vmem:[%s3725_s3] sm:$0xff]   ;;  %v3062_v6 = vld [vmem:[#allocation2 + $0x8] sm:$0xff]   ;;  %v3064_v14 = vld [vmem:[#allocation2 + $0x18] sm:$0xff]   ;;  %vm381_vm5 = vcmask 523264   ;;  %vm3190_vm6 = vmmov 0   ;;  %vm1055_vm7 = vcmask 64512  }
  0x29   :  { %2552 = vmatprep.subr.bf16.mxu1 %v3059_v3  ;;  %v3061_v5 = vld [vmem:[#allocation2] sm:$0xff]   ;;  %v227_v17 = vld [vmem:[%s3723_s1 + $0x8] sm:$0xff]  ;;  %v3067_v0 = vld [vmem:[%s3726_s4 + $0x10] sm:$0xff]   ;;  %vm3193_vm9 = vmmov 1   ;;  %s3194_s19 = smov [#allocation7]  }
  0x2a   :  { %2553 = vmatpush3.bf16.msra.mxu1 %v3059_v3  ;;  %2560 = vmatprep.subr.bf16.mxu0 %v3061_v5  ;;  %v3065_v15 = vld [vmem:[%s3726_s4] sm:$0xff]   ;;  %v236_v19 = vrot.slane %v227_v17, 7  ;;  %v3066_v58 = vld [vmem:[%s3726_s4 + $0x8] sm:$0xff]   ;;  %v228_v1 = vld [vmem:[%s3723_s1 + $0x10] sm:$0xff]  ;;  %s2261_s2 = sshll.u32 %s3194_s19, 4  ;;  %s2262_s2 = int_to_ptr.vmem [resolvable:$true] %s2261_s2 }
  0x2b   :  { %2549 = vmatmul.mubr.msk.bf16.vlgmr.msra.gmra.mrb[0].mxu0 %vm96_vm0, %v3058_v2  ;;  %2554 = vmatprep.subr.bf16.mxu1 %v3060_v4  ;;  %v226_v16 = vld [vmem:[%s3723_s1] sm:$0xff]  ;;  %v229_v2 = vld [vmem:[%s3723_s1 + $0x18] sm:$0xff]  ;;  %v3070_v17 = vld [vmem:[%s3726_s4 + $0x28] sm:$0xff]   ;;  %p3162_p3 = scmp.lt.s32.totalorder %s2262_s2, %s2262_s2 }
  0x2c   :  { %2561 = vmatpush3.bf16.msra.mxu0 %v3061_v5  ;;  %v235_v18 = vrot.slane %v226_v16, 7  ;;  %v249_v3 = vsel %vm234_vm2, %v236_v19, 0.0  ;;  %v239_v5 = vrot.slane %v229_v2, 7  ;;  %v971_v2 = vld [vmem:[%s3729_s7 + $0x20] sm:$0xff]  ;;  %vm2356_vm8 = vmneg %vm234_vm2 }
  0x2d   :  { %2562 = vmatprep.subr.bf16.mxu0 %v3062_v6  ;;  %vm3634_vm10 = vmpackc.low %vm3193_vm9, %vm2356_vm8 }
  0x2e   :  { %2555 = vmatpush3.bf16.msra.mxu1 %v3060_v4  ;;  %v3318_v23 = vsel %vm234_vm2, %v235_v18, %v236_v19  ;;  %v3321_v24 = vsel %vm234_vm2, 0.0, %v235_v18  ;;  %v238_v4 = vrot.slane %v228_v1, 7  ;;  %v3071_v18 = vld [vmem:[%s3726_s4 + $0x30] sm:$0xff]   ;;  %v250_v19 = vsel %vm234_vm2, %v239_v5, 0.0 }
  0x2f   :  { %v337_v32 = vpack.c.bf16 %v3318_v23, %v3321_v24 }
  0x30   :  { %2563 = vmatpush3.bf16.msra.mxu0 %v3062_v6  ;;  %v3068_v6 = vld [vmem:[%s3726_s4 + $0x18] sm:$0xff]  }
  0x31   :  { %2564 = vmatprep.subr.bf16.mxu0 %v3063_v13 }
  0x34   :  { %2565 = vmatpush3.bf16.msra.mxu0 %v3063_v13 }
  0x35   :  { %2566 = vmatprep.subr.bf16.mxu0 %v3064_v14 }
  0x38   :  { %2567 = vmatpush3.bf16.msra.mxu0 %v3064_v14 }
  0x39   :  { %2572 = vmatprep.subr.bf16.mxu0 %v3065_v15 }
  0xfe   :  { %v2550_v7 = vpop.f32.mrb[0].mxu0 }
  0xff   :  { %v137_v8 = vpop.f32.mrb[1].mxu0 }
 0x100   :  { %v2551_v9 = vpop.f32.mrb[2].mxu0 }
 0x101   :  { %v153_v10 = vpack.c.bf16 %v2551_v9, %v2550_v7  ;;  %v140_v11 = vpop.f32.mrb[3].mxu0  ;;  %v256_v7 = vrot.slane %v3321_v24, 1  ;;  %v259_v9 = vrot.slane %v249_v3, 1 }
 0x102   :  { %v152_v12 = vpack.c.bf16 %v140_v11, %v137_v8  ;;  %v257_v8 = vrot.slane %v3318_v23, 1  ;;  %v3382_v11 = vsel %vm234_vm2, 0.0, %v238_v4 }
 0x104   :  { %2556 = vmatprep.mubr.msk.bf16.mxu1 %vm170_vm1, %v152_v12  ;;  %v3069_v12 = vld [vmem:[%s3726_s4 + $0x20] sm:$0xff]   ;;  %v258_v13 = vsel %vm255_vm3, %v256_v7, %v257_v8  ;;  %v260_v14 = vsel %vm255_vm3, %v257_v8, %v259_v9  ;;  %v976_v9 = vld [vmem:[%s3729_s7 + $0x48] sm:$0xff] }
 0x105   :  { %2557 = vmatmul.mubr.msk.bf16.vlgmr.msra.gmra.mrb[0].mxu1 %vm170_vm1, %v153_v10  ;;  %v3379_v10 = vsel %vm234_vm2, %v238_v4, %v239_v5  ;;  %v516_v16 = vpack.c.bf16 %v260_v14, %v258_v13  ;;  %v973_v5 = vld [vmem:[%s3729_s7 + $0x30] sm:$0xff]  ;;  %v975_v8 = vld [vmem:[%s3729_s7 + $0x40] sm:$0xff] }
 0x106   :  { %v979_v14 = vld [vmem:[%s3729_s7 + $0x60] sm:$0xff] }
 0x1d8   :  { %v2558_v20 = vpop.f32.mrb[0].mxu1 }
 0x1d9   :  { %v292_v21 = vrot.slane %v2558_v20, 7  ;;  %v211_v22 = vpop.f32.mrb[1].mxu1  ;;  %v261_v20 = vrot.slane %v3382_v11, 1 }
 0x1da   :  { %v289_v25 = vrot.slane %v211_v22, 7  ;;  %v2559_v26 = vpop.f32.mrb[2].mxu1  ;;  %v264_v22 = vrot.slane %v250_v19, 1 }
 0x1db   :  { %v302_v27 = vsel %vm234_vm2, 0.0, %v292_v21  ;;  %v293_v28 = vrot.slane %v2559_v26, 7  ;;  %v214_v29 = vpop.f32.mrb[3].mxu1 }
 0x1dc   :  { %v301_v30 = vsel %vm234_vm2, 0.0, %v289_v25  ;;  %v290_v31 = vrot.slane %v214_v29, 7  ;;  %v314_v33 = vrot.slane %v302_v27, 1  ;;  %v328_v34 = vrot.slane %v302_v27, 2 }
 0x1dd   :  { %v294_v35 = vsel %vm234_vm2, %v292_v21, %v293_v28  ;;  %v304_v36 = vsel %vm234_vm2, %v293_v28, 0.0  ;;  %v309_v41 = vrot.slane %v301_v30, 1  ;;  %v323_v53 = vrot.slane %v301_v30, 2  ;;  %v3073_v28 = vld [vmem:[#allocation2 + $0x20] sm:$0xff]  }
 0x1de   :  { %v315_v37 = vrot.slane %v294_v35, 1  ;;  %v317_v38 = vrot.slane %v304_v36, 1  ;;  %v329_v39 = vrot.slane %v294_v35, 2  ;;  %v331_v40 = vrot.slane %v304_v36, 2  ;;  %v3077_v36 = vld [vmem:[%s3726_s4 + $0x40] sm:$0xff]  }
 0x1df   :  { %v348_v42 = vpack.c.bf16 %v294_v35, %v302_v27  ;;  %v291_v43 = vsel %vm234_vm2, %v289_v25, %v290_v31  ;;  %v303_v44 = vsel %vm234_vm2, %v290_v31, 0.0  ;;  %v262_v21 = vrot.slane %v3379_v10, 1  ;;  %v3072_v25 = vld [vmem:[%s3726_s4 + $0x38] sm:$0xff]   ;;  %v3075_v31 = vld [vmem:[#allocation2 + $0x30] sm:$0xff]  }
 0x1e0   :  { %v3332_v45 = vsel %vm255_vm3, %v314_v33, %v315_v37  ;;  %v3335_v46 = vsel %vm255_vm3, %v315_v37, %v317_v38  ;;  %v3338_v47 = vsel %vm270_vm4, %v328_v34, %v329_v39  ;;  %v3341_v48 = vsel %vm270_vm4, %v329_v39, %v331_v40  ;;  %v3076_v34 = vld [vmem:[#allocation2 + $0x38] sm:$0xff]  }
 0x1e1   :  { %v611_v49 = vpack.c.bf16 %v3335_v46, %v3332_v45  ;;  %v799_v50 = vpack.c.bf16 %v3341_v48, %v3338_v47  ;;  %v310_v51 = vrot.slane %v291_v43, 1  ;;  %v312_v52 = vrot.slane %v303_v44, 1  ;;  %v3081_v46 = vld [vmem:[#allocation2 + $0x40] sm:$0xff]  }
 0x1e2   :  { %v324_v54 = vrot.slane %v291_v43, 2  ;;  %v326_v55 = vrot.slane %v303_v44, 2  ;;  %v347_v56 = vpack.c.bf16 %v291_v43, %v301_v30  ;;  %v263_v26 = vsel %vm255_vm3, %v261_v20, %v262_v21  ;;  %v3074_v30 = vld [vmem:[#allocation2 + $0x28] sm:$0xff]   ;;  %v3080_v43 = vld [vmem:[%s3726_s4 + $0x58] sm:$0xff]  }
 0x1e3   :  { %v313_v57 = vsel %vm255_vm3, %v310_v51, %v312_v52  ;;  %v311_v59 = vsel %vm255_vm3, %v309_v41, %v310_v51  ;;  %v265_v27 = vsel %vm255_vm3, %v262_v21, %v264_v22  ;;  %v272_v33 = vrot.slane %v3318_v23, 2  ;;  %v3078_v23 = vld [vmem:[%s3726_s4 + $0x48] sm:$0xff]   ;;  %v3083_v52 = vld [vmem:[#allocation2 + $0x50] sm:$0xff]   ;;  %v3552_v22 = vld [vmem:[%s3730_s8] sm:$0xff] }
 0x1e4   :  { %v3353_v60 = vsel %vm270_vm4, %v324_v54, %v326_v55  ;;  %2568 = vmatprep.mubr.msk.bf16.mxu0 %vm381_vm5, %v347_v56  ;;  %v610_v61 = vpack.c.bf16 %v313_v57, %v311_v59  ;;  %v3357_v62 = vsel %vm270_vm4, %v323_v53, %v324_v54  ;;  %v517_v29 = vpack.c.bf16 %v265_v27, %v263_v26  ;;  %v3082_v51 = vld [vmem:[#allocation2 + $0x48] sm:$0xff]   ;;  %v3084_v53 = vld [vmem:[#allocation2 + $0x58] sm:$0xff]   ;;  %v967_v59 = vld [vmem:[%s3729_s7] sm:$0xff] }
 0x1e5   :  { %2569 = vmatmul.mubr.msk.bf16.vlgmr.msra.gmra.mrb[4].mxu0 %vm381_vm5, %v348_v42  ;;  %v798_v63 = vpack.c.bf16 %v3353_v60, %v3357_v62  ;;  %v274_v35 = vrot.slane %v249_v3, 2  ;;  %v276_v40 = vrot.slane %v3382_v11, 2  ;;  %v277_v41 = vrot.slane %v3379_v10, 2  ;;  %v968_v60 = vld [vmem:[%s3729_s7 + $0x8] sm:$0xff]  ;;  %v969_v62 = vld [vmem:[%s3729_s7 + $0x10] sm:$0xff] }
 0x1e6   :  { %2573 = vmatpush3.bf16.msra.mxu0 %v3065_v15  ;;  %2580 = vmatprep.mubr.msk.bf16.mxu0 %vm381_vm5, %v337_v32  ;;  %v338_v15 = vpack.c.bf16 %v3379_v10, %v3382_v11  ;;  %v271_v32 = vrot.slane %v3321_v24, 2  ;;  %v3079_v24 = vld [vmem:[%s3726_s4 + $0x50] sm:$0xff]   ;;  %v279_v42 = vrot.slane %v250_v19, 2  ;;  %v3189_v54 = vmov 0.0|0.0   ;;  %v972_v3 = vld [vmem:[%s3729_s7 + $0x28] sm:$0xff] }
 0x1e7   :  { %2574 = vmatprep.subr.bf16.mxu0 %v3066_v58  ;;  %v275_v38 = vsel %vm270_vm4, %v272_v33, %v274_v35  ;;  %v278_v44 = vsel %vm270_vm4, %v276_v40, %v277_v41  ;;  %2896 = vmatprep.subr.bf16.mxu1 %v3189_v54  ;;  %v3191_v55 = vmov 0.0   ;;  %v3492_v4 = vpack.c.bf16 %v972_v3, %v971_v2  ;;  %v977_v11 = vld [vmem:[%s3729_s7 + $0x50] sm:$0xff] }
 0x1e8   :  { %v273_v37 = vsel %vm270_vm4, %v271_v32, %v272_v33  ;;  %v280_v45 = vsel %vm270_vm4, %v277_v41, %v279_v42  ;;  %2640 = vmatprep.mubr.msk.f32.mxu1 %vm3190_vm6, %v3191_v55  ;;  %v3512_v10 = vpack.c.bf16 %v976_v9, %v975_v8 }
 0x1e9   :  { %v704_v39 = vpack.c.bf16 %v275_v38, %v273_v37 }
 0x1ea   :  { %2575 = vmatpush3.bf16.msra.mxu0 %v3066_v58 }
 0x1eb   :  { %2576 = vmatprep.subr.bf16.mxu0 %v3067_v0 }
 0x1ee   :  { %2577 = vmatpush3.bf16.msra.mxu0 %v3067_v0  ;;  %v3192_v0 = vmov 1.0  }
 0x1ef   :  { %2578 = vmatprep.subr.bf16.mxu0 %v3068_v6 }
 0x1f2   :  { %2579 = vmatpush3.bf16.msra.mxu0 %v3068_v6  ;;  %v974_v6 = vld [vmem:[%s3729_s7 + $0x38] sm:$0xff] }
 0x1f3   :  { %2584 = vmatprep.subr.bf16.mxu0 %v3069_v12  ;;  %v3502_v7 = vpack.c.bf16 %v974_v6, %v973_v5  ;;  %v2339_v5 = vld [vmem:[%s3732_s10] ss:$0 sm:$0xff] }
 0x1f5   :  { %2581 = vmatmul.mubr.msk.bf16.vlgmr.msra.gmra.mrb[4].mxu0 %vm381_vm5, %v338_v15  ;;  %v980_v15 = vld [vmem:[%s3729_s7 + $0x68] sm:$0xff] }
 0x1f6   :  { %2585 = vmatpush3.bf16.msra.mxu0 %v3069_v12  ;;  %2592 = vmatprep.mubr.msk.bf16.mxu0 %vm381_vm5, %v516_v16  ;;  %v978_v12 = vld [vmem:[%s3729_s7 + $0x58] sm:$0xff]  ;;  %v3532_v16 = vpack.c.bf16 %v980_v15, %v979_v14 }
 0x1f7   :  { %2586 = vmatprep.subr.bf16.mxu0 %v3070_v17  ;;  %v3522_v13 = vpack.c.bf16 %v978_v12, %v977_v11 }
 0x1fa   :  { %2587 = vmatpush3.bf16.msra.mxu0 %v3070_v17  ;;  %v981_v17 = vld [vmem:[%s3729_s7 + $0x70] sm:$0xff] }
 0x1fb   :  { %2588 = vmatprep.subr.bf16.mxu0 %v3071_v18 }
 0x1fe   :  { %2589 = vmatpush3.bf16.msra.mxu0 %v3071_v18  ;;  %v982_v18 = vld [vmem:[%s3729_s7 + $0x78] sm:$0xff] }
 0x1ff   :  { %2590 = vmatprep.subr.bf16.mxu0 %v3072_v25  ;;  %v3542_v19 = vpack.c.bf16 %v982_v18, %v981_v17 }
 0x202   :  { %2591 = vmatpush3.bf16.msra.mxu0 %v3072_v25 }
 0x203   :  { %2596 = vmatprep.subr.bf16.mxu0 %v3073_v28 }
 0x205   :  { %2593 = vmatmul.mubr.msk.bf16.vlgmr.msra.gmra.mrb[4].mxu0 %vm381_vm5, %v517_v29 }
 0x206   :  { %2597 = vmatpush3.bf16.msra.mxu0 %v3073_v28  ;;  %2604 = vmatprep.mubr.msk.bf16.mxu0 %vm381_vm5, %v610_v61  ;;  %v3468_v61 = vpack.c.bf16 %v968_v60, %v967_v59  ;;  %v1129_v28 = vlaneseq }
 0x207   :  { %2598 = vmatprep.subr.bf16.mxu0 %v3074_v30 }
 0x208   :  { %v1130_v29 = vshrl.u32 %v1129_v28, 7 }
 0x20a   :  { %2599 = vmatpush3.bf16.msra.mxu0 %v3074_v30  ;;  %v3559_v30 = vsub.s32 0, %v1130_v29 }
 0x20b   :  { %2600 = vmatprep.subr.bf16.mxu0 %v3075_v31 }
 0x20e   :  { %2601 = vmatpush3.bf16.msra.mxu0 %v3075_v31 }
 0x20f   :  { %2602 = vmatprep.subr.bf16.mxu0 %v3076_v34 }
 0x212   :  { %2603 = vmatpush3.bf16.msra.mxu0 %v3076_v34 }
 0x213   :  { %2608 = vmatprep.subr.bf16.mxu0 %v3077_v36 }
 0x215   :  { %2605 = vmatmul.mubr.msk.bf16.vlgmr.msra.gmra.mrb[4].mxu0 %vm381_vm5, %v611_v49  ;;  %v705_v49 = vpack.c.bf16 %v280_v45, %v278_v44 }
 0x216   :  { %2609 = vmatpush3.bf16.msra.mxu0 %v3077_v36  ;;  %2616 = vmatprep.mubr.msk.bf16.mxu0 %vm381_vm5, %v704_v39 }
 0x217   :  { %2610 = vmatprep.subr.bf16.mxu0 %v3078_v23 }
 0x21a   :  { %2611 = vmatpush3.bf16.msra.mxu0 %v3078_v23 }
 0x21b   :  { %2612 = vmatprep.subr.bf16.mxu0 %v3079_v24 }
 0x21e   :  { %2613 = vmatpush3.bf16.msra.mxu0 %v3079_v24 }
 0x21f   :  { %2614 = vmatprep.subr.bf16.mxu0 %v3080_v43 }
 0x222   :  { %2615 = vmatpush3.bf16.msra.mxu0 %v3080_v43 }
 0x223   :  { %2620 = vmatprep.subr.bf16.mxu0 %v3081_v46 }
 0x225   :  { %2617 = vmatmul.mubr.msk.bf16.vlgmr.msra.gmra.mrb[4].mxu0 %vm381_vm5, %v705_v49  ;;  %v3085_v49 = vld [vmem:[#allocation5 + $0x40] sm:$0xff]  }
 0x226   :  { %2621 = vmatpush3.bf16.msra.mxu0 %v3081_v46  ;;  %2628 = vmatprep.mubr.msk.bf16.mxu0 %vm381_vm5, %v798_v63  ;;  %v970_v63 = vld [vmem:[%s3729_s7 + $0x18] sm:$0xff] }
 0x227   :  { %2622 = vmatprep.subr.bf16.mxu0 %v3082_v51  ;;  %v3480_v1 = vpack.c.bf16 %v970_v63, %v969_v62  ;;  %v892_v62 = vld [vmem:[%s3731_s9] sm:$0x1] }
 0x22a   :  { %2623 = vmatpush3.bf16.msra.mxu0 %v3082_v51  ;;  %v3086_v51 = vld [vmem:[#allocation5 + $0x48] sm:$0xff]  }
 0x22b   :  { %2624 = vmatprep.subr.bf16.mxu0 %v3083_v52 }
 0x22e   :  { %2625 = vmatpush3.bf16.msra.mxu0 %v3083_v52  ;;  %v3087_v52 = vld [vmem:[#allocation5 + $0x50] sm:$0xff]  }
 0x22f   :  { %2626 = vmatprep.subr.bf16.mxu0 %v3084_v53 }
 0x232   :  { %2627 = vmatpush3.bf16.msra.mxu0 %v3084_v53  ;;  %v3088_v53 = vld [vmem:[#allocation5 + $0x58] sm:$0xff]  }
 0x233   :  { %2956 = vmatprep.subr.bf16.mxu0 %v3189_v54 }
 0x235   :  { %2629 = vmatmul.mubr.msk.bf16.vlgmr.msra.gmra.mrb[4].mxu0 %vm381_vm5, %v799_v50 }
 0x236   :  { %2802 = vmatprep.mubr.msk.f32.mxu0 %vm3190_vm6, %v3191_v55 }
 0x308   :  { %v3449_v56 = vpop.f32.mrb[4].mxu0 }
 0x309   :  { %v3451_v57 = vpop.f32.mrb[5].mxu0 }
 0x30a   :  { %v3453_v47 = vpop.f32.mrb[6].mxu0 }
 0x30b   :  { %v2900_v48 = vpack.c.bf16 %v3453_v47, %v3449_v56  ;;  %v3457_v50 = vpop.f32.mrb[7].mxu0 }
 0x30c   :  { %v2897_v58 = vpack.c.bf16 %v3457_v50, %v3451_v57 }
 0x30e   :  { %2898 = vmatpush3.bf16.msra.mxu1 %v2897_v58 }
 0x30f   :  { %2899 = vmatprep.subr.bf16.mxu1 %v3189_v54 }
 0x312   :  { %2901 = vmatpush3.bf16.msra.mxu1 %v2900_v48  ;;  %v3092_v48 = vld [vmem:[#allocation5 + $0x78] sm:$0xff]  }
 0x313   :  { %2902 = vmatprep.subr.bf16.mxu1 %v3189_v54 }
 0x315   :  { %2641 = vmatmul.mubr.msk.f32.vlgmr.msra.gmra.mrb[4].mxu1 %vm170_vm1, %v3192_v0 }
 0x316   :  { %2904 = vmatpush3.bf16.msra.mxu1 %v3468_v61  ;;  %2675 = vmatprep.mubr.msk.f32.mxu1 %vm3190_vm6, %v3191_v55 }
 0x317   :  { %2905 = vmatprep.subr.bf16.mxu1 %v3189_v54 }
 0x31a   :  { %2907 = vmatpush3.bf16.msra.mxu1 %v3480_v1 }
 0x31b   :  { %2908 = vmatprep.subr.bf16.mxu1 %v3189_v54 }
 0x31e   :  { %2910 = vmatpush3.bf16.msra.mxu1 %v3492_v4 }
 0x31f   :  { %2911 = vmatprep.subr.bf16.mxu1 %v3189_v54 }
 0x322   :  { %2913 = vmatpush3.bf16.msra.mxu1 %v3502_v7 }
 0x323   :  { %2914 = vmatprep.subr.bf16.mxu1 %v3189_v54 }
 0x326   :  { %2916 = vmatpush3.bf16.msra.mxu1 %v3512_v10 }
 0x327   :  { %2917 = vmatprep.subr.bf16.mxu1 %v3189_v54 }
 0x32a   :  { %2919 = vmatpush3.bf16.msra.mxu1 %v3522_v13 }
 0x32b   :  { %2920 = vmatprep.subr.bf16.mxu1 %v3189_v54 }
 0x32e   :  { %2922 = vmatpush3.bf16.msra.mxu1 %v3532_v16 }
 0x32f   :  { %2923 = vmatprep.subr.bf16.mxu1 %v3189_v54 }
 0x332   :  { %2925 = vmatpush3.bf16.msra.mxu1 %v3542_v19 }
 0x333   :  { %2678 = vmatprep.subr.mxu1 %v3191_v55 }
 0x3e8   :  { %v963_v20 = vpop.f32.mrb[4].mxu1 }
 0x3e9   :  { %v2642_v21 = vpop.f32.mrb[5].mxu1  ;;  %2676 = vmatmul.mubr.f32.vlgmr.msra.gmra.mrb[6].mxu1 %v963_v20 }
 0x3ea   :  { %2680 = vmatprep.mubr.msk.f32.mxu1 %vm3190_vm6, %v3191_v55  ;;  %2679 = vmatpush3.msra.mxu1 %v3552_v22 }
 0x3eb   :  { %2926 = vmatprep.subr.bf16.mxu1 %v3189_v54 }
 0x4bc   :  { %v1049_v25 = vpop.f32.mrb[6].mxu1 }
 0x4bd   :  { %v1053_v26 = vmul.f32 0.001953125, %v1049_v25  ;;  %v2677_v27 = vpop.f32.mrb[7].mxu1 }
 0x4bf   :  { %2681 = vmatmul.mubr.msk.f32.vlgmr.msra.gmra.mrb[8].mxu1 %vm1055_vm7, %v1053_v26 }
 0x4c0   :  { %2691 = vmatprep.mubr.msk.f32.mxu1 %vm3190_vm6, %v3191_v55 }
 0x592   :  { %v1125_v31 = vpop.f32.mrb[8].mxu1 }
 0x593   :  { %v1132_v32 = vrot.slane %v1125_v31, %v3559_v30  ;;  %v2682_v33 = vpop.f32.mrb[9].mxu1 }
 0x595   :  { %v3563_v34 = vsub.f32 %v3451_v57, %v1132_v32  ;;  %v3566_v35 = vsub.f32 %v3457_v50, %v1132_v32  ;;  %v3569_v36 = vsub.f32 %v3449_v56, %v1132_v32  ;;  %v3572_v37 = vsub.f32 %v3453_v47, %v1132_v32  ;;  %v3089_v56 = vld [vmem:[#allocation5 + $0x60] sm:$0xff]   ;;  %v3090_v57 = vld [vmem:[#allocation5 + $0x68] sm:$0xff]   ;;  %v3091_v47 = vld [vmem:[#allocation5 + $0x70] sm:$0xff]  }
 0x596   :  { %v3093_v50 = vld [vmem:[#allocation5] sm:$0xff]  }
 0x597   :  { %v1137_v38 = vmul.f32 %v3563_v34, %v3563_v34  ;;  %v1138_v39 = vmul.f32 %v3566_v35, %v3566_v35  ;;  %v1139_v24 = vmul.f32 %v3569_v36, %v3569_v36  ;;  %v1140_v40 = vmul.f32 %v3572_v37, %v3572_v37 }
 0x599   :  { %v2927_v23 = vpack.c.bf16 %v1138_v39, %v1137_v38  ;;  %v2930_v41 = vpack.c.bf16 %v1140_v40, %v1139_v24 }
 0x59b   :  { %2928 = vmatpush3.bf16.msra.mxu1 %v2927_v23 }
 0x59c   :  { %2929 = vmatprep.subr.bf16.mxu1 %v3189_v54 }
 0x59f   :  { %2931 = vmatpush3.bf16.msra.mxu1 %v2930_v41 }
 0x5a0   :  { %2932 = vmatprep.subr.bf16.mxu1 %v3189_v54 }
 0x5a2   :  { %2692 = vmatmul.mubr.msk.f32.vlgmr.msra.gmra.mrb[10].mxu1 %vm170_vm1, %v3192_v0 }
 0x5a3   :  { %2934 = vmatpush3.bf16.msra.mxu1 %v3468_v61  ;;  %2726 = vmatprep.mubr.msk.f32.mxu1 %vm3190_vm6, %v3191_v55 }
 0x5a4   :  { %2935 = vmatprep.subr.bf16.mxu1 %v3189_v54 }
 0x5a7   :  { %2937 = vmatpush3.bf16.msra.mxu1 %v3480_v1 }
 0x5a8   :  { %2938 = vmatprep.subr.bf16.mxu1 %v3189_v54 }
 0x5ab   :  { %2940 = vmatpush3.bf16.msra.mxu1 %v3492_v4 }
 0x5ac   :  { %2941 = vmatprep.subr.bf16.mxu1 %v3189_v54 }
 0x5af   :  { %2943 = vmatpush3.bf16.msra.mxu1 %v3502_v7 }
 0x5b0   :  { %2944 = vmatprep.subr.bf16.mxu1 %v3189_v54 }
 0x5b3   :  { %2946 = vmatpush3.bf16.msra.mxu1 %v3512_v10 }
 0x5b4   :  { %2947 = vmatprep.subr.bf16.mxu1 %v3189_v54 }
 0x5b7   :  { %2949 = vmatpush3.bf16.msra.mxu1 %v3522_v13 }
 0x5b8   :  { %2950 = vmatprep.subr.bf16.mxu1 %v3189_v54 }
 0x5bb   :  { %2952 = vmatpush3.bf16.msra.mxu1 %v3532_v16 }
 0x5bc   :  { %2953 = vmatprep.subr.bf16.mxu1 %v3189_v54 }
 0x5bf   :  { %2955 = vmatpush3.bf16.msra.mxu1 %v3542_v19 }
 0x5c0   :  { %2729 = vmatprep.subr.mxu1 %v3191_v55 }
 0x675   :  { %v1207_v42 = vpop.f32.mrb[10].mxu1 }
 0x676   :  { %v2693_v43 = vpop.f32.mrb[11].mxu1  ;;  %2727 = vmatmul.mubr.f32.vlgmr.msra.gmra.mrb[12].mxu1 %v1207_v42 }
 0x677   :  { %2730 = vmatpush3.msra.mxu1 %v3552_v22  ;;  %2731 = vmatprep.mubr.msk.f32.mxu1 %vm3190_vm6, %v3191_v55 }
 0x678   :  { %2734 = vmatprep.subr.bf16.mxu1 %v3085_v49 }
 0x749   :  { %v1277_v44 = vpop.f32.mrb[12].mxu1 }
 0x74a   :  { %v1281_v45 = vmul.f32 0.001953125, %v1277_v44  ;;  %v2728_v46 = vpop.f32.mrb[13].mxu1 }
 0x74c   :  { %2732 = vmatmul.mubr.msk.f32.vlgmr.msra.gmra.mrb[14].mxu1 %vm1055_vm7, %v1281_v45 }
 0x74d   :  { %2735 = vmatpush3.bf16.msra.mxu1 %v3085_v49 }
 0x74e   :  { %2736 = vmatprep.subr.bf16.mxu1 %v3086_v51 }
 0x751   :  { %2737 = vmatpush3.bf16.msra.mxu1 %v3086_v51 }
 0x752   :  { %2738 = vmatprep.subr.bf16.mxu1 %v3087_v52 }
 0x755   :  { %2739 = vmatpush3.bf16.msra.mxu1 %v3087_v52 }
 0x756   :  { %2740 = vmatprep.subr.bf16.mxu1 %v3088_v53 }
 0x759   :  { %2741 = vmatpush3.bf16.msra.mxu1 %v3088_v53  ;;  %v3094_v53 = vld [vmem:[#allocation5 + $0x8] sm:$0xff]  }
 0x75a   :  { %2742 = vmatprep.subr.bf16.mxu1 %v3089_v56 }
 0x75d   :  { %2743 = vmatpush3.bf16.msra.mxu1 %v3089_v56 }
 0x75e   :  { %2744 = vmatprep.subr.bf16.mxu1 %v3090_v57 }
 0x761   :  { %2745 = vmatpush3.bf16.msra.mxu1 %v3090_v57 }
 0x762   :  { %2746 = vmatprep.subr.bf16.mxu1 %v3091_v47 }
 0x765   :  { %2747 = vmatpush3.bf16.msra.mxu1 %v3091_v47 }
 0x766   :  { %2748 = vmatprep.subr.bf16.mxu1 %v3092_v48 }
 0x769   :  { %2749 = vmatpush3.bf16.msra.mxu1 %v3092_v48 }
 0x76a   :  { %2754 = vmatprep.subr.bf16.mxu1 %v3093_v50 }
 0x81f   :  { %v1351_v58 = vpop.f32.mrb[14].mxu1 }
 0x820   :  { %v1352_v59 = vadd.f32 1e-05, %v1351_v58  ;;  %v2733_v60 = vpop.f32.mrb[15].mxu1 }
 0x821   :  { %v3096_v60 = vld [vmem:[#allocation5 + $0x18] sm:$0xff]  }
 0x822   :  { %3109 = vrsqrt.f32 %v1352_v59  ;;  %v3095_v59 = vld [vmem:[#allocation5 + $0x10] sm:$0xff]  }
 0x82c   :  { %v3110_v63 = vpop.eup %3109 }
 0x82d   :  { %v1356_v2 = vmul.f32 %v3110_v63, %v892_v62  ;;  %v3097_v62 = vld [vmem:[#allocation5 + $0x20] sm:$0xff]   ;;  %v3098_v63 = vld [vmem:[#allocation5 + $0x28] sm:$0xff]  }
 0x82f   :  { %v1361_v3 = vrot.slane %v1356_v2, %v3559_v30  ;;  %v3099_v2 = vld [vmem:[#allocation5 + $0x30] sm:$0xff]  }
 0x831   :  { %v1363_v6 = vmul.f32 %v1361_v3, %v3563_v34  ;;  %v1364_v8 = vmul.f32 %v1361_v3, %v3566_v35  ;;  %v1365_v9 = vmul.f32 %v1361_v3, %v3569_v36  ;;  %v1366_v11 = vmul.f32 %v1361_v3, %v3572_v37 }
 0x833   :  { %v1373_v12 = vadd.f32 %v2339_v5, %v1363_v6  ;;  %v1374_v14 = vadd.f32 %v2339_v5, %v1364_v8  ;;  %v1375_v15 = vadd.f32 %v2339_v5, %v1365_v9  ;;  %v1376_v17 = vadd.f32 %v2339_v5, %v1366_v11  ;;  %v3101_v8 = vld [vmem:[#allocation5 + $0x80] sm:$0xff]  }
 0x835   :  { %v1377_v18 = vmax.f32 %v1373_v12, 0.0  ;;  %v1378_v20 = vmax.f32 %v1374_v14, 0.0  ;;  %v1379_v21 = vmax.f32 %v1375_v15, 0.0  ;;  %v1380_v25 = vmax.f32 %v1376_v17, 0.0  ;;  %v3102_v14 = vld [vmem:[#allocation5 + $0x88] sm:$0xff]   ;;  %v3103_v17 = vld [vmem:[#allocation5 + $0x90] sm:$0xff]  }
 0x837   :  { %v1385_v26 = vrot.slane %v1377_v18, 7  ;;  %v1386_v27 = vrot.slane %v1378_v20, 7  ;;  %v3619_v28 = vrot.slane %v1379_v21, 7  ;;  %v1389_v29 = vrot.slane %v1380_v25, 7  ;;  %v3104_v18 = vld [vmem:[#allocation5 + $0x98] sm:$0xff]   ;;  %v3105_v20 = vld [vmem:[#allocation5 + $0xa0] sm:$0xff]  }
 0x838   :  { %v3106_v21 = vld [vmem:[#allocation5 + $0xa8] sm:$0xff]   ;;  %v3107_v25 = vld [vmem:[#allocation5 + $0xb0] sm:$0xff]  }
 0x839   :  { %v1387_v31 = vsel %vm234_vm2, %v1385_v26, %v1386_v27  ;;  %v1397_v32 = vsel %vm234_vm2, 0.0, %v1385_v26  ;;  %v1399_v33 = vsel %vm234_vm2, %v1386_v27, 0.0  ;;  %v1390_v34 = vsel %vm234_vm2, %v3619_v28, %v1389_v29 }
 0x83a   :  { %v1405_v35 = vrot.slane %v1397_v32, 1  ;;  %v1406_v36 = vrot.slane %v1387_v31, 1  ;;  %v1408_v37 = vrot.slane %v1399_v33, 1  ;;  %v1398_v38 = vsel %vm234_vm2, 0.0, %v3619_v28 }
 0x83b   :  { %v1400_v39 = vsel %vm234_vm2, %v1389_v29, 0.0  ;;  %v1410_v23 = vrot.slane %v1398_v38, 1  ;;  %v1411_v24 = vrot.slane %v1390_v34, 1  ;;  %v1424_v46 = vrot.slane %v1398_v38, 2 }
 0x83c   :  { %v1407_v40 = vsel %vm255_vm3, %v1405_v35, %v1406_v36  ;;  %v1409_v41 = vsel %vm255_vm3, %v1406_v36, %v1408_v37  ;;  %v1413_v42 = vrot.slane %v1400_v39, 1  ;;  %v1425_v49 = vrot.slane %v1390_v34, 2 }
 0x83d   :  { %v1451_v43 = vpack.c.bf16 %v1409_v41, %v1407_v40  ;;  %v1412_v44 = vsel %vm255_vm3, %v1410_v23, %v1411_v24  ;;  %v1427_v56 = vrot.slane %v1400_v39, 2  ;;  %v2358_v57 = vpack.c.bf16 %v1387_v31, %v1385_v26  ;;  %v3108_v26 = vld [vmem:[#allocation5 + $0xb8] sm:$0xff]  }
 0x83e   :  { %v1414_v45 = vsel %vm255_vm3, %v1411_v24, %v1413_v42  ;;  %v1426_v47 = vsel %vm270_vm4, %v1424_v46, %v1425_v49  ;;  %v1419_v3 = vrot.slane %v1397_v32, 2  ;;  %v1420_v5 = vrot.slane %v1387_v31, 2 }
 0x83f   :  { %2750 = vmatprep.mubr.bf16.mxu1 %v1451_v43  ;;  %v1452_v51 = vpack.c.bf16 %v1414_v45, %v1412_v44  ;;  %v1428_v48 = vsel %vm270_vm4, %v1425_v49, %v1427_v56  ;;  %v1422_v6 = vrot.slane %v1399_v33, 2  ;;  %v2362_v12 = vpack.c.bf16 %v1390_v34, %v3619_v28 }
 0x840   :  { %v1665_v58 = vpack.c.bf16 %v1428_v48, %v1426_v47  ;;  %v1421_v9 = vsel %vm270_vm4, %v1419_v3, %v1420_v5 }
 0x841   :  { %2751 = vmatmul.mubr.bf16.vlgmr.msra.gmra.mrb[16].mxu1 %v1452_v51  ;;  %v1423_v11 = vsel %vm270_vm4, %v1420_v5, %v1422_v6 }
 0x842   :  { %2755 = vmatpush3.bf16.msra.mxu1 %v3093_v50  ;;  %2770 = vmatprep.mubr.msk.bf16.mxu1 %vm3634_vm10, %v2358_v57  ;;  %v3100_v50 = vld [vmem:[#allocation5 + $0x38] sm:$0xff]   ;;  %v1664_v15 = vpack.c.bf16 %v1423_v11, %v1421_v9 }
 0x843   :  { %2756 = vmatprep.subr.bf16.mxu1 %v3094_v53 }
 0x846   :  { %2757 = vmatpush3.bf16.msra.mxu1 %v3094_v53 }
 0x847   :  { %2758 = vmatprep.subr.bf16.mxu1 %v3095_v59 }
 0x84a   :  { %2759 = vmatpush3.bf16.msra.mxu1 %v3095_v59 }
 0x84b   :  { %2760 = vmatprep.subr.bf16.mxu1 %v3096_v60 }
 0x84e   :  { %2761 = vmatpush3.bf16.msra.mxu1 %v3096_v60 }
 0x84f   :  { %2762 = vmatprep.subr.bf16.mxu1 %v3097_v62 }
 0x852   :  { %2763 = vmatpush3.bf16.msra.mxu1 %v3097_v62 }
 0x853   :  { %2764 = vmatprep.subr.bf16.mxu1 %v3098_v63 }
 0x856   :  { %2765 = vmatpush3.bf16.msra.mxu1 %v3098_v63 }
 0x857   :  { %2766 = vmatprep.subr.bf16.mxu1 %v3099_v2 }
 0x85a   :  { %2767 = vmatpush3.bf16.msra.mxu1 %v3099_v2 }
 0x85b   :  { %2768 = vmatprep.subr.bf16.mxu1 %v3100_v50 }
 0x85e   :  { %2769 = vmatpush3.bf16.msra.mxu1 %v3100_v50 }
 0x85f   :  { %2774 = vmatprep.subr.bf16.mxu1 %v3101_v8 }
 0x861   :  { %2771 = vmatmul.mubr.msk.bf16.vlgmr.msra.gmra.mrb[16].mxu1 %vm3634_vm10, %v2362_v12 }
 0x862   :  { %2775 = vmatpush3.bf16.msra.mxu1 %v3101_v8  ;;  %2790 = vmatprep.mubr.bf16.mxu1 %v1664_v15 }
 0x863   :  { %2776 = vmatprep.subr.bf16.mxu1 %v3102_v14 }
 0x866   :  { %2777 = vmatpush3.bf16.msra.mxu1 %v3102_v14 }
 0x867   :  { %2778 = vmatprep.subr.bf16.mxu1 %v3103_v17 }
 0x86a   :  { %2779 = vmatpush3.bf16.msra.mxu1 %v3103_v17 }
 0x86b   :  { %2780 = vmatprep.subr.bf16.mxu1 %v3104_v18 }
 0x86e   :  { %2781 = vmatpush3.bf16.msra.mxu1 %v3104_v18 }
 0x86f   :  { %2782 = vmatprep.subr.bf16.mxu1 %v3105_v20 }
 0x872   :  { %2783 = vmatpush3.bf16.msra.mxu1 %v3105_v20 }
 0x873   :  { %2784 = vmatprep.subr.bf16.mxu1 %v3106_v21 }
 0x876   :  { %2785 = vmatpush3.bf16.msra.mxu1 %v3106_v21 }
 0x877   :  { %2786 = vmatprep.subr.bf16.mxu1 %v3107_v25 }
 0x87a   :  { %2787 = vmatpush3.bf16.msra.mxu1 %v3107_v25 }
 0x87b   :  { %2788 = vmatprep.subr.bf16.mxu1 %v3108_v26 }
 0x87e   :  { %2789 = vmatpush3.bf16.msra.mxu1 %v3108_v26 }
 0x881   :  { %2791 = vmatmul.mubr.bf16.vlgmr.msra.gmra.mrb[16].mxu1 %v1665_v58 }
 0x954   :  { %v2792_v27 = vpop.f32.mrb[16].mxu1 }
 0x955   :  { %v1765_v28 = vpop.f32.mrb[17].mxu1 }
 0x956   :  { %v2793_v29 = vpop.f32.mrb[18].mxu1 }
 0x957   :  { %v2960_v31 = vpack.c.bf16 %v2793_v29, %v2792_v27  ;;  %v1768_v32 = vpop.f32.mrb[19].mxu1 }
 0x958   :  { %v2957_v33 = vpack.c.bf16 %v1768_v32, %v1765_v28 }
 0x95a   :  { %2958 = vmatpush3.bf16.msra.mxu0 %v2957_v33 }
 0x95b   :  { %2959 = vmatprep.subr.bf16.mxu0 %v3189_v54 }
 0x95e   :  { %2961 = vmatpush3.bf16.msra.mxu0 %v2960_v31 }
 0x95f   :  { %2962 = vmatprep.subr.bf16.mxu0 %v3189_v54 }
 0x961   :  { %2803 = vmatmul.mubr.msk.f32.vlgmr.msra.gmra.mrb[8].mxu0 %vm170_vm1, %v3192_v0 }
 0x962   :  { %2964 = vmatpush3.bf16.msra.mxu0 %v3468_v61  ;;  %2837 = vmatprep.mubr.msk.f32.mxu0 %vm3190_vm6, %v3191_v55 }
 0x963   :  { %2965 = vmatprep.subr.bf16.mxu0 %v3189_v54 }
 0x966   :  { %2967 = vmatpush3.bf16.msra.mxu0 %v3480_v1 }
 0x967   :  { %2968 = vmatprep.subr.bf16.mxu0 %v3189_v54 }
 0x96a   :  { %2970 = vmatpush3.bf16.msra.mxu0 %v3492_v4 }
 0x96b   :  { %2971 = vmatprep.subr.bf16.mxu0 %v3189_v54 }
 0x96e   :  { %2973 = vmatpush3.bf16.msra.mxu0 %v3502_v7 }
 0x96f   :  { %2974 = vmatprep.subr.bf16.mxu0 %v3189_v54 }
 0x972   :  { %2976 = vmatpush3.bf16.msra.mxu0 %v3512_v10 }
 0x973   :  { %2977 = vmatprep.subr.bf16.mxu0 %v3189_v54 }
 0x976   :  { %2979 = vmatpush3.bf16.msra.mxu0 %v3522_v13 }
 0x977   :  { %2980 = vmatprep.subr.bf16.mxu0 %v3189_v54 }
 0x97a   :  { %2982 = vmatpush3.bf16.msra.mxu0 %v3532_v16 }
 0x97b   :  { %2983 = vmatprep.subr.bf16.mxu0 %v3189_v54 }
 0x97e   :  { %2985 = vmatpush3.bf16.msra.mxu0 %v3542_v19 }
 0x97f   :  { %2840 = vmatprep.subr.mxu0 %v3191_v55 }
 0xa34   :  { %v1852_v34 = vpop.f32.mrb[8].mxu0 }
 0xa35   :  { %v2804_v35 = vpop.f32.mrb[9].mxu0  ;;  %2838 = vmatmul.mubr.f32.vlgmr.msra.gmra.mrb[10].mxu0 %v1852_v34 }
 0xa36   :  { %2841 = vmatpush3.msra.mxu0 %v3552_v22  ;;  %2842 = vmatprep.mubr.msk.f32.mxu0 %vm3190_vm6, %v3191_v55 }
 0xa37   :  { %2986 = vmatprep.subr.bf16.mxu0 %v3189_v54 }
 0xb08   :  { %v1922_v36 = vpop.f32.mrb[10].mxu0 }
 0xb09   :  { %v1926_v37 = vmul.f32 0.001953125, %v1922_v36  ;;  %v2839_v38 = vpop.f32.mrb[11].mxu0 }
 0xb0b   :  { %2843 = vmatmul.mubr.msk.f32.vlgmr.msra.gmra.mrb[12].mxu0 %vm1055_vm7, %v1926_v37 }
 0xb0c   :  { %2853 = vmatprep.mubr.msk.f32.mxu0 %vm3190_vm6, %v3191_v55 }
 0xbde   :  { %v1996_v39 = vpop.f32.mrb[12].mxu0 }
 0xbdf   :  { %v2003_v23 = vrot.slane %v1996_v39, %v3559_v30  ;;  %v2844_v24 = vpop.f32.mrb[13].mxu0 }
 0xbe1   :  { %v2004_v40 = vsub.f32 %v1765_v28, %v2003_v23  ;;  %v2005_v41 = vsub.f32 %v1768_v32, %v2003_v23  ;;  %v2006_v42 = vsub.f32 %v2792_v27, %v2003_v23  ;;  %v2007_v43 = vsub.f32 %v2793_v29, %v2003_v23 }
 0xbe3   :  { %v2008_v44 = vmul.f32 %v2004_v40, %v2004_v40  ;;  %v2009_v45 = vmul.f32 %v2005_v41, %v2005_v41  ;;  %v2010_v49 = vmul.f32 %v2006_v42, %v2006_v42  ;;  %v2011_v51 = vmul.f32 %v2007_v43, %v2007_v43 }
 0xbe5   :  { %v2987_v46 = vpack.c.bf16 %v2009_v45, %v2008_v44  ;;  %v2990_v52 = vpack.c.bf16 %v2011_v51, %v2010_v49 }
 0xbe7   :  { %2988 = vmatpush3.bf16.msra.mxu0 %v2987_v46 }
 0xbe8   :  { %2989 = vmatprep.subr.bf16.mxu0 %v3189_v54 }
 0xbeb   :  { %2991 = vmatpush3.bf16.msra.mxu0 %v2990_v52 }
 0xbec   :  { %2992 = vmatprep.subr.bf16.mxu0 %v3189_v54 }
 0xbee   :  { %2854 = vmatmul.mubr.msk.f32.vlgmr.msra.gmra.mrb[14].mxu0 %vm170_vm1, %v3192_v0 }
 0xbef   :  { %2994 = vmatpush3.bf16.msra.mxu0 %v3468_v61  ;;  %2888 = vmatprep.mubr.msk.f32.mxu0 %vm3190_vm6, %v3191_v55 }
 0xbf0   :  { %2995 = vmatprep.subr.bf16.mxu0 %v3189_v54 }
 0xbf3   :  { %2997 = vmatpush3.bf16.msra.mxu0 %v3480_v1 }
 0xbf4   :  { %2998 = vmatprep.subr.bf16.mxu0 %v3189_v54 }
 0xbf7   :  { %3000 = vmatpush3.bf16.msra.mxu0 %v3492_v4 }
 0xbf8   :  { %3001 = vmatprep.subr.bf16.mxu0 %v3189_v54 }
 0xbfb   :  { %3003 = vmatpush3.bf16.msra.mxu0 %v3502_v7 }
 0xbfc   :  { %3004 = vmatprep.subr.bf16.mxu0 %v3189_v54 }
 0xbff   :  { %3006 = vmatpush3.bf16.msra.mxu0 %v3512_v10 }
 0xc00   :  { %3007 = vmatprep.subr.bf16.mxu0 %v3189_v54 }
 0xc03   :  { %3009 = vmatpush3.bf16.msra.mxu0 %v3522_v13 }
 0xc04   :  { %3010 = vmatprep.subr.bf16.mxu0 %v3189_v54 }
 0xc07   :  { %3012 = vmatpush3.bf16.msra.mxu0 %v3532_v16  ;;  %v1784_v16 = vld [vmem:[%s3733_s11] sm:$0x1]  ;;  %s3157_s11 = scalar_lea.vmem %s2262_s2, 512 }
 0xc08   :  { %3013 = vmatprep.subr.bf16.mxu0 %v3189_v54  ;;  %p3158_p2 = scmp.ne.s32.totalorder %s2262_s2, %s3157_s11  ;;  %p3163_p4 = scmp.lt.s32.totalorder %s3157_s11, %s3157_s11 }
 0xc0a   :  { %p3164_p5 = por %p3163_p4, %p3162_p3 }
 0xc0b   :  { %3015 = vmatpush3.bf16.msra.mxu0 %v3542_v19 }
 0xc0c   :  { %2891 = vmatprep.subr.mxu0 %v3191_v55  ;;  %p3165_p6 = pnand %p3164_p5, %p3158_p2 }
 0xcc1   :  { %v2078_v61 = vpop.f32.mrb[14].mxu0 }
 0xcc2   :  { %v2855_v0 = vpop.f32.mrb[15].mxu0  ;;  %2889 = vmatmul.mubr.f32.vlgmr.msra.gmra.mrb[16].mxu0 %v2078_v61 }
 0xcc3   :  { %2892 = vmatpush3.msra.mxu0 %v3552_v22  ;;  %2893 = vmatprep.mubr.msk.f32.mxu0 %vm3190_vm6, %v3191_v55  ;;  %v2376_v55 = vld [vmem:[%s3734_s12] ss:$0 sm:$0xff] }
 0xd95   :  { %v2148_v1 = vpop.f32.mrb[16].mxu0 }
 0xd96   :  { %v2152_v4 = vmul.f32 0.001953125, %v2148_v1  ;;  %v2890_v7 = vpop.f32.mrb[17].mxu0 }
 0xd98   :  { %2894 = vmatmul.mubr.msk.f32.vlgmr.msra.gmra.mrb[18].mxu0 %vm1055_vm7, %v2152_v4 }
 0xe6b   :  { %v2222_v10 = vpop.f32.mrb[18].mxu0 }
 0xe6c   :  { %v2223_v13 = vadd.f32 1e-05, %v2222_v10  ;;  %v2895_v54 = vpop.f32.mrb[19].mxu0 }
 0xe6e   :  { %3111 = vrsqrt.f32 %v2223_v13 }
 0xe78   :  { %v3112_v19 = vpop.eup %3111 }
 0xe79   :  { %v2227_v53 = vmul.f32 %v3112_v19, %v1784_v16 }
 0xe7b   :  { %v2232_v22 = vrot.slane %v2227_v53, %v3559_v30 }
 0xe7d   :  { %v2234_v56 = vmul.f32 %v2232_v22, %v2004_v40  ;;  %v2235_v57 = vmul.f32 %v2232_v22, %v2005_v41  ;;  %v2236_v47 = vmul.f32 %v2232_v22, %v2006_v42  ;;  %v2237_v48 = vmul.f32 %v2232_v22, %v2007_v43 }
 0xe7f   :  { %v2244_v58 = vadd.f32 %v2376_v55, %v2234_v56  ;;  %v2245_v59 = vadd.f32 %v2376_v55, %v2235_v57  ;;  %v2246_v60 = vadd.f32 %v2376_v55, %v2236_v47  ;;  %v2247_v62 = vadd.f32 %v2376_v55, %v2237_v48 }
 0xe81   :  { %v2248_v63 = vmax.f32 %v2244_v58, 0.0  ;;  %v2249_v2 = vmax.f32 %v2245_v59, 0.0  ;;  %v2250_v50 = vmax.f32 %v2246_v60, 0.0  ;;  %v2251_v3 = vmax.f32 %v2247_v62, 0.0 }
 0xe83   :  { %2252 = vst [vmem:[#allocation7] sm:$0xff] %v2248_v63  ;;  %2253 = vst [vmem:[#allocation7 + $0x8] sm:$0xff] %v2249_v2 }
 0xe84   :  { %2254 = vst [vmem:[#allocation7 + $0x10] sm:$0xff] %v2250_v50  ;;  %2255 = vst [vmem:[#allocation7 + $0x18] sm:$0xff] %v2251_v3 }
 0xe85   :  { %3168 = shalt.err (!%p3165_p6)
}
 0xe86   :  { %s3169_s23 = scalar_lea.hbm %s3735_s13, 512 }
 0xe87   :  { %p3170_p7 = scmp.ne.s32.totalorder %s3735_s13, %s3169_s23  ;;  %p3173_p8 = scmp.lt.u32.totalorder %s3169_s23, %s3735_s13 }
 0xe89   :  { %p3175_p9 = pnand %p3173_p8, %p3170_p7 }
 0xe8b   :  { %3178 = shalt.err (!%p3175_p9)
}
 0xe8c   :  { %s3195_s30 = smov 128   ;;  %s3196_s14 = smov 8  }
 0xe8d   :  { %2267 = dma.vmem_to_hbm [thread:$0]  %s2262_s2, 512, %s3735_s13, [#allocation4], %s3195_s30, %s3195_s30, %s3196_s14  }
 0xe8e   :  { %3183 = dma.done.wait [#allocation4], 512  }
 0xe8f   :  { %3184 = vsyncadd [#allocation4], 4294966784 }
 0xe90   :  { %2271 = vsyncpa [#allocation3], 1 }
 0xe91   :  { %2272 = vsyncpa [#allocation6], 1 }
 0xe92   :  { %2273 = vsyncpa [#allocation4], 1 }

</bundles_post_ra>
